<compile_context>
chip_gen: v7x
topology: tpu7x:2x2x1
jax: 0.10.0
libtpu: 0.0.40
codegen_flags: <defaults>
</compile_context>

<pallas_src>
import functools
import math

import jax
import jax.numpy as jnp
from jax.experimental import pallas as pl
from jax.experimental.pallas import tpu as pltpu


# ----------------------------- kernel ---------------------------------------

def _layernorm(x, gamma, beta, eps=1e-5):
    # LayerNorm over last dim, biased variance (PyTorch semantics), f32 math.
    mu = jnp.mean(x, axis=-1, keepdims=True)
    var = jnp.mean((x - mu) ** 2, axis=-1, keepdims=True)
    return (x - mu) * jax.lax.rsqrt(var + eps) * gamma + beta


def encoder_kernel(
    k_ref, q_ref, v_ref,                 # (Nt, D) row blocks, Nt = bt * S
    wq_ref, bq_ref,                      # (D, D) [mxu dtype, pre-scaled by 1/sqrt(dh)], (1, D) f32
    wk_ref, bk_ref,                      # (D, D), (1, D)
    wv_ref, bv_ref,                      # (D, D), (1, D)
    wo_ref, bo_ref,                      # (D, D), (1, D)
    g1_ref, be1_ref,                     # attention LayerNorm gamma/beta (1, D)
    w1_ref, b1_ref, w2_ref, b2_ref,      # feed-forward linears (D, Hf), (1, Hf)
    g2_ref, be2_ref,                     # final LayerNorm gamma/beta (1, D)
    out_ref,                             # (Nt, D)
    *, num_heads, seq_len, mxu_dtype,
):
    Nt, D = k_ref.shape
    H = num_heads
    S = seq_len
    Bt = Nt // S
    dh = D // H

    # Residual stream (both residuals add k), f32.
    k_res = k_ref[...].astype(jnp.float32)

    # MXU operands in bf16 (or the input dtype when already narrow); f32 accum.
    k2 = k_ref[...].astype(mxu_dtype)
    q2 = q_ref[...].astype(mxu_dtype)
    v2 = v_ref[...].astype(mxu_dtype)

    # --- full-width projections: one (Nt,D)@(D,D) matmul per q/k/v ----------
    # 1/sqrt(dh) is folded into wq/bq on the host.
    qp = jnp.dot(q2, wq_ref[...], preferred_element_type=jnp.float32) + bq_ref[...]
    kp = jnp.dot(k2, wk_ref[...], preferred_element_type=jnp.float32) + bk_ref[...]
    vp = jnp.dot(v2, wv_ref[...], preferred_element_type=jnp.float32) + bv_ref[...]
    qp = qp.astype(mxu_dtype)
    kp = kp.astype(mxu_dtype)
    vp = vp.astype(mxu_dtype)

    # --- multi-head attention ------------------------------------------------
    # Only the intrinsically per-head, dh-wide score/PV contractions live in
    # this (small, static) loop; all full-width matmuls are hoisted out.
    # TODO(synk): for production S (>=512) replace the materialized (Bt,S,S)
    # scores with a flash-style KV-tiled online softmax (m/l/acc in VMEM
    # scratch), and for large H switch to lax.fori_loop(..., unroll=True).
    head_outs = []
    for h in range(H):
        lo = h * dh
        qb = qp[:, lo:lo + dh].reshape(Bt, S, dh)
        kb = kp[:, lo:lo + dh].reshape(Bt, S, dh)
        vb = vp[:, lo:lo + dh].reshape(Bt, S, dh)

        s = jnp.einsum('bqd,bkd->bqk', qb, kb,
                       preferred_element_type=jnp.float32)            # (Bt,S,S)
        s = s - jnp.max(s, axis=-1, keepdims=True)
        p = jnp.exp(s)
        p = p * pl.reciprocal(jnp.sum(p, axis=-1, keepdims=True), approx=True)

        ob = jnp.einsum('bqk,bkd->bqd', p.astype(mxu_dtype), vb,
                        preferred_element_type=jnp.float32)           # (Bt,S,dh)
        head_outs.append(ob.reshape(Nt, dh))

    o = jnp.concatenate(head_outs, axis=-1)                           # (Nt, D)

    # Single full-width output projection (replaces per-head Wo accumulation).
    attn = jnp.dot(o.astype(mxu_dtype), wo_ref[...],
                   preferred_element_type=jnp.float32) + bo_ref[...]

    # --- residual + (dropout=identity) + LayerNorm ---------------------------
    add_norm = _layernorm(attn + k_res, g1_ref[...], be1_ref[...])

    # --- feed-forward: Linear -> ReLU -> Linear -> (dropout=identity) --------
    h1 = jnp.dot(add_norm.astype(mxu_dtype), w1_ref[...],
                 preferred_element_type=jnp.float32) + b1_ref[...]
    h1 = jnp.maximum(h1, 0.0)
    ff = jnp.dot(h1.astype(mxu_dtype), w2_ref[...],
                 preferred_element_type=jnp.float32) + b2_ref[...]

    # --- final residual (with original k) + LayerNorm ------------------------
    out = _layernorm(ff + k_res, g2_ref[...], be2_ref[...])
    out_ref[...] = out.astype(out_ref.dtype)


# ----------------------------- wrapper ---------------------------------------

def _choose_batch_tile(B, S):
    """Largest bt dividing B with bt*S <= 1024 rows per step and >= 2 grid steps.

    >= 2 steps shards across v7x's two TensorCores and lets BlockSpec
    auto-pipelining overlap the next tile's q/k/v DMA with the current tile's
    compute; ~512-1024 rows per step keeps the MXU fed without blowing VMEM.
    """
    best = 1
    for c in range(1, B + 1):
        if B % c:
            continue
        if c * S > 1024:
            continue
        if c != 1 and (B // c) < 2:
            continue
        best = c
    return best


def encoder_forward(k, q, v, params, num_heads, batch_tile=None,
                    use_bf16_mxu=True, vmem_limit_bytes=64 * 1024 * 1024):
    B, S, D = k.shape
    H = num_heads
    assert D % H == 0, "d_model must be divisible by num_heads"
    dh = D // H
    # The PyTorch module is only shape-consistent when hidden_size == d_model.
    assert params["w1"].shape[1] == params["w2"].shape[0] == D, \
        "Encoder requires hidden_size == d_model"
    Hf = params["w1"].shape[1]

    # bf16 MXU operands (f32 accumulation) even for f32 inputs; softmax/LN stay f32.
    mxu_dtype = jnp.bfloat16 if use_bf16_mxu else k.dtype

    # Host-side layout plumbing: fold the 1/sqrt(dh) softmax scale into Wq/bq,
    # ship matmul weights in the MXU dtype (halves their DMA/VMEM footprint),
    # keep biases / LayerNorm params in f32.
    scale = 1.0 / math.sqrt(dh)
    wq = (params["wq"] * scale).astype(mxu_dtype)
    bq = (params["bq"] * scale).astype(jnp.float32)
    wk = params["wk"].astype(mxu_dtype)
    wv = params["wv"].astype(mxu_dtype)
    wo = params["wo"].astype(mxu_dtype)
    w1 = params["w1"].astype(mxu_dtype)
    w2 = params["w2"].astype(mxu_dtype)

    plist = [wq, bq,
             wk, params["bk"].astype(jnp.float32),
             wv, params["bv"].astype(jnp.float32),
             wo, params["bo"].astype(jnp.float32),
             params["g1"], params["be1"],
             w1, params["b1"].astype(jnp.float32),
             w2, params["b2"].astype(jnp.float32),
             params["g2"], params["be2"]]

    bt = _choose_batch_tile(B, S) if batch_tile is None else batch_tile
    assert B % bt == 0
    Nt = bt * S          # rows per grid step (multiple of 8 as long as S % 8 == 0 or bt % 8 == 0)

    # Pre-flatten to (B*S, D) row blocks so the kernel consumes 2-D tiles
    # directly (no in-kernel reshape of the streamed inputs).
    k2d = k.reshape(B * S, D)
    q2d = q.reshape(B * S, D)
    v2d = v.reshape(B * S, D)

    seq_spec = pl.BlockSpec((Nt, D), lambda i: (i, 0))

    def full_spec(shape):
        nd = len(shape)
        return pl.BlockSpec(shape, lambda i, _nd=nd: (0,) * _nd)   # resident weights

    in_specs = [seq_spec, seq_spec, seq_spec] + [full_spec(p.shape) for p in plist]
    out_spec = pl.BlockSpec((Nt, D), lambda i: (i, 0))
    # NOTE: at D >= 128 (production) this (Nt, D) store is already lane-dense;
    # at this toy D=32 the masked store is negligible and keeps the block shape
    # (8,128)-legal for any bt.

    kernel = functools.partial(encoder_kernel, num_heads=H, seq_len=S,
                               mxu_dtype=mxu_dtype)
    out_flat = pl.pallas_call(
        kernel,
        out_shape=jax.ShapeDtypeStruct((B * S, D), k.dtype),
        grid_spec=pltpu.PrefetchScalarGridSpec(
            num_scalar_prefetch=0,
            grid=(B // bt,),
            in_specs=in_specs,
            out_specs=out_spec,
        ),
        compiler_params=pltpu.CompilerParams(
            dimension_semantics=("parallel",),
            vmem_limit_bytes=vmem_limit_bytes),
    )(k2d, q2d, v2d, *plist)

    return out_flat.reshape(B, S, D)


# ----------------------------- reference (pure JAX) ---------------------------

def encoder_reference(k, q, v, params, num_heads):
    B, S, D = k.shape
    dh = D // num_heads
    kf, qf, vf = k.astype(jnp.float32), q.astype(jnp.float32), v.astype(jnp.float32)

    def proj(x, w, b):
        return jnp.einsum("bsd,de->bse", x, w) + b

    qp = proj(qf, params["wq"], params["bq"])
    kp = proj(kf, params["wk"], params["bk"])
    vp = proj(vf, params["wv"], params["bv"])

    def split(x):
        return x.reshape(B, S, num_heads, dh).transpose(0, 2, 1, 3)  # (B,H,S,dh)

    qh, kh, vh = split(qp), split(kp), split(vp)
    s = jnp.einsum("bhqd,bhkd->bhqk", qh, kh) / jnp.sqrt(jnp.float32(dh))
    p = jax.nn.softmax(s, axis=-1)
    o = jnp.einsum("bhqk,bhkd->bhqd", p, vh).transpose(0, 2, 1, 3).reshape(B, S, D)
    attn = jnp.einsum("bsd,de->bse", o, params["wo"]) + params["bo"]

    def ln(x, g, b, eps=1e-5):
        mu = jnp.mean(x, axis=-1, keepdims=True)
        var = jnp.mean((x - mu) ** 2, axis=-1, keepdims=True)
        return (x - mu) * jax.lax.rsqrt(var + eps) * g + b

    add_norm = ln(attn + kf, params["g1"], params["be1"])
    h1 = jnp.maximum(jnp.einsum("bsd,de->bse", add_norm, params["w1"]) + params["b1"], 0.0)
    ff = jnp.einsum("bsd,de->bse", h1, params["w2"]) + params["b2"]
    return ln(ff + kf, params["g2"], params["be2"])


# ----------------------------- main -------------------------------------------

if __name__ == "__main__":
    B, S = 2, 8
    d_model = 32
    hidden_size = 32      # must equal d_model for the PyTorch module to be well-defined
    num_heads = 4

    key = jax.random.PRNGKey(0)
    ks = jax.random.split(key, 16)

    def lin(kk, fan_in, fan_out):
        # deterministic Linear init (uniform, bound = 1/sqrt(fan_in)); weight is
        # stored pre-transposed as (in, out) so the kernel does x @ W + b.
        bound = 1.0 / jnp.sqrt(jnp.float32(fan_in))
        kw, kb = jax.random.split(kk)
        w = jax.random.uniform(kw, (fan_in, fan_out), jnp.float32, -bound, bound)
        b = jax.random.uniform(kb, (1, fan_out), jnp.float32, -bound, bound)
        return w, b

    wq, bq = lin(ks[0], d_model, d_model)
    wk, bk = lin(ks[1], d_model, d_model)
    wv, bv = lin(ks[2], d_model, d_model)
    wo, bo = lin(ks[3], d_model, d_model)
    w1, b1 = lin(ks[4], d_model, hidden_size)
    w2, b2 = lin(ks[5], d_model, hidden_size)   # Linear(d_model, hidden_size), as in the module

    params = dict(
        wq=wq, bq=bq, wk=wk, bk=bk, wv=wv, bv=bv, wo=wo, bo=bo,
        g1=jnp.ones((1, d_model), jnp.float32), be1=jnp.zeros((1, d_model), jnp.float32),
        w1=w1, b1=b1, w2=w2, b2=b2,
        g2=jnp.ones((1, d_model), jnp.float32), be2=jnp.zeros((1, d_model), jnp.float32),
    )

    k_in = jax.random.normal(ks[6], (B, S, d_model), jnp.float32)
    q_in = jax.random.normal(ks[7], (B, S, d_model), jnp.float32)
    v_in = jax.random.normal(ks[8], (B, S, d_model), jnp.float32)

    out = encoder_forward(k_in, q_in, v_in, params, num_heads)
    out = jax.block_until_ready(out)

    ref = encoder_reference(k_in, q_in, v_in, params, num_heads)
    assert out.shape == (B, S, d_model)
    # Tolerance accounts for bf16 MXU operands (f32 reference) and the
    # approximate EUP reciprocal in the softmax normalization; structural bugs
    # would produce O(1) errors.
    assert jnp.allclose(out, ref, atol=5e-2, rtol=5e-2), "Pallas output mismatch vs reference"

    print("KERNEL_OK")
</pallas_src>

<mosaic_0001>
module attributes {stable_mosaic.version = 11 : i64} {
  func.func @encoder_kernel(%arg0: i32, %arg1: memref<8x32xf32, #tpu.memory_space<vmem>>, %arg2: memref<8x32xf32, #tpu.memory_space<vmem>>, %arg3: memref<8x32xf32, #tpu.memory_space<vmem>>, %arg4: memref<32x32xbf16, #tpu.memory_space<vmem>>, %arg5: memref<1x32xf32, #tpu.memory_space<vmem>>, %arg6: memref<32x32xbf16, #tpu.memory_space<vmem>>, %arg7: memref<1x32xf32, #tpu.memory_space<vmem>>, %arg8: memref<32x32xbf16, #tpu.memory_space<vmem>>, %arg9: memref<1x32xf32, #tpu.memory_space<vmem>>, %arg10: memref<32x32xbf16, #tpu.memory_space<vmem>>, %arg11: memref<1x32xf32, #tpu.memory_space<vmem>>, %arg12: memref<1x32xf32, #tpu.memory_space<vmem>>, %arg13: memref<1x32xf32, #tpu.memory_space<vmem>>, %arg14: memref<32x32xbf16, #tpu.memory_space<vmem>>, %arg15: memref<1x32xf32, #tpu.memory_space<vmem>>, %arg16: memref<32x32xbf16, #tpu.memory_space<vmem>>, %arg17: memref<1x32xf32, #tpu.memory_space<vmem>>, %arg18: memref<1x32xf32, #tpu.memory_space<vmem>>, %arg19: memref<1x32xf32, #tpu.memory_space<vmem>>, %arg20: memref<8x32xf32, #tpu.memory_space<vmem>>) attributes {dimension_semantics = [#tpu.dimension_semantics<parallel>], iteration_bounds = array<i64: 2>, scalar_prefetch = 0 : i64, scratch_operands = 0 : i64, tpu.core_type = #tpu.core_type<tc>, window_params = [{transform_indices = @transform_0, window_bounds = array<i64: 8, 32>}, {transform_indices = @transform_1, window_bounds = array<i64: 8, 32>}, {transform_indices = @transform_2, window_bounds = array<i64: 8, 32>}, {pipeline_mode = #tpu.pipeline_mode<synchronous>, transform_indices = @transform_3, window_bounds = array<i64: 32, 32>}, {pipeline_mode = #tpu.pipeline_mode<synchronous>, transform_indices = @transform_4, window_bounds = array<i64: 1, 32>}, {pipeline_mode = #tpu.pipeline_mode<synchronous>, transform_indices = @transform_5, window_bounds = array<i64: 32, 32>}, {pipeline_mode = #tpu.pipeline_mode<synchronous>, transform_indices = @transform_6, window_bounds = array<i64: 1, 32>}, {pipeline_mode = #tpu.pipeline_mode<synchronous>, transform_indices = @transform_7, window_bounds = array<i64: 32, 32>}, {pipeline_mode = #tpu.pipeline_mode<synchronous>, transform_indices = @transform_8, window_bounds = array<i64: 1, 32>}, {pipeline_mode = #tpu.pipeline_mode<synchronous>, transform_indices = @transform_9, window_bounds = array<i64: 32, 32>}, {pipeline_mode = #tpu.pipeline_mode<synchronous>, transform_indices = @transform_10, window_bounds = array<i64: 1, 32>}, {pipeline_mode = #tpu.pipeline_mode<synchronous>, transform_indices = @transform_11, window_bounds = array<i64: 1, 32>}, {pipeline_mode = #tpu.pipeline_mode<synchronous>, transform_indices = @transform_12, window_bounds = array<i64: 1, 32>}, {pipeline_mode = #tpu.pipeline_mode<synchronous>, transform_indices = @transform_13, window_bounds = array<i64: 32, 32>}, {pipeline_mode = #tpu.pipeline_mode<synchronous>, transform_indices = @transform_14, window_bounds = array<i64: 1, 32>}, {pipeline_mode = #tpu.pipeline_mode<synchronous>, transform_indices = @transform_15, window_bounds = array<i64: 32, 32>}, {pipeline_mode = #tpu.pipeline_mode<synchronous>, transform_indices = @transform_16, window_bounds = array<i64: 1, 32>}, {pipeline_mode = #tpu.pipeline_mode<synchronous>, transform_indices = @transform_17, window_bounds = array<i64: 1, 32>}, {pipeline_mode = #tpu.pipeline_mode<synchronous>, transform_indices = @transform_18, window_bounds = array<i64: 1, 32>}, {transform_indices = @transform_19, window_bounds = array<i64: 8, 32>}]} {
    %c0 = arith.constant 0 : index
    %c0_0 = arith.constant 0 : index
    %0 = vector.load %arg1[%c0, %c0_0] : memref<8x32xf32, #tpu.memory_space<vmem>>, vector<8x32xf32>
    %c0_1 = arith.constant 0 : index
    %c0_2 = arith.constant 0 : index
    %1 = vector.load %arg1[%c0_1, %c0_2] : memref<8x32xf32, #tpu.memory_space<vmem>>, vector<8x32xf32>
    %2 = arith.truncf %1 : vector<8x32xf32> to vector<8x32xbf16>
    %c0_3 = arith.constant 0 : index
    %c0_4 = arith.constant 0 : index
    %3 = vector.load %arg2[%c0_3, %c0_4] : memref<8x32xf32, #tpu.memory_space<vmem>>, vector<8x32xf32>
    %4 = arith.truncf %3 : vector<8x32xf32> to vector<8x32xbf16>
    %c0_5 = arith.constant 0 : index
    %c0_6 = arith.constant 0 : index
    %5 = vector.load %arg3[%c0_5, %c0_6] : memref<8x32xf32, #tpu.memory_space<vmem>>, vector<8x32xf32>
    %6 = arith.truncf %5 : vector<8x32xf32> to vector<8x32xbf16>
    %c0_7 = arith.constant 0 : index
    %c0_8 = arith.constant 0 : index
    %7 = vector.load %arg4[%c0_7, %c0_8] : memref<32x32xbf16, #tpu.memory_space<vmem>>, vector<32x32xbf16>
    %cst = arith.constant dense<0.000000e+00> : vector<8x32xf32>
    %8 = tpu.matmul %4, %7, %cst {dimension_numbers = #tpu.dot_dimension_numbers<[1], [0], [0], [1], [0, 0, 1, 1], [], []>} : vector<8x32xbf16>, vector<32x32xbf16>, vector<8x32xf32> -> vector<8x32xf32>
    %c0_9 = arith.constant 0 : index
    %c0_10 = arith.constant 0 : index
    %9 = vector.load %arg5[%c0_9, %c0_10] : memref<1x32xf32, #tpu.memory_space<vmem>>, vector<1x32xf32>
    %10 = vector.broadcast %9 : vector<1x32xf32> to vector<8x32xf32>
    %11 = arith.addf %8, %10 : vector<8x32xf32>
    %c0_11 = arith.constant 0 : index
    %c0_12 = arith.constant 0 : index
    %12 = vector.load %arg6[%c0_11, %c0_12] : memref<32x32xbf16, #tpu.memory_space<vmem>>, vector<32x32xbf16>
    %cst_13 = arith.constant dense<0.000000e+00> : vector<8x32xf32>
    %13 = tpu.matmul %2, %12, %cst_13 {dimension_numbers = #tpu.dot_dimension_numbers<[1], [0], [0], [1], [0, 0, 1, 1], [], []>} : vector<8x32xbf16>, vector<32x32xbf16>, vector<8x32xf32> -> vector<8x32xf32>
    %c0_14 = arith.constant 0 : index
    %c0_15 = arith.constant 0 : index
    %14 = vector.load %arg7[%c0_14, %c0_15] : memref<1x32xf32, #tpu.memory_space<vmem>>, vector<1x32xf32>
    %15 = vector.broadcast %14 : vector<1x32xf32> to vector<8x32xf32>
    %16 = arith.addf %13, %15 : vector<8x32xf32>
    %c0_16 = arith.constant 0 : index
    %c0_17 = arith.constant 0 : index
    %17 = vector.load %arg8[%c0_16, %c0_17] : memref<32x32xbf16, #tpu.memory_space<vmem>>, vector<32x32xbf16>
    %cst_18 = arith.constant dense<0.000000e+00> : vector<8x32xf32>
    %18 = tpu.matmul %6, %17, %cst_18 {dimension_numbers = #tpu.dot_dimension_numbers<[1], [0], [0], [1], [0, 0, 1, 1], [], []>} : vector<8x32xbf16>, vector<32x32xbf16>, vector<8x32xf32> -> vector<8x32xf32>
    %c0_19 = arith.constant 0 : index
    %c0_20 = arith.constant 0 : index
    %19 = vector.load %arg9[%c0_19, %c0_20] : memref<1x32xf32, #tpu.memory_space<vmem>>, vector<1x32xf32>
    %20 = vector.broadcast %19 : vector<1x32xf32> to vector<8x32xf32>
    %21 = arith.addf %18, %20 : vector<8x32xf32>
    %22 = arith.truncf %11 : vector<8x32xf32> to vector<8x32xbf16>
    %23 = arith.truncf %16 : vector<8x32xf32> to vector<8x32xbf16>
    %24 = arith.truncf %21 : vector<8x32xf32> to vector<8x32xbf16>
    %25 = vector.extract_strided_slice %22 {offsets = [0, 0], sizes = [8, 8], strides = [1, 1]} : vector<8x32xbf16> to vector<8x8xbf16>
    %26 = vector.shape_cast %25 : vector<8x8xbf16> to vector<1x8x8xbf16>
    %27 = vector.extract_strided_slice %23 {offsets = [0, 0], sizes = [8, 8], strides = [1, 1]} : vector<8x32xbf16> to vector<8x8xbf16>
    %28 = vector.shape_cast %27 : vector<8x8xbf16> to vector<1x8x8xbf16>
    %29 = vector.extract_strided_slice %24 {offsets = [0, 0], sizes = [8, 8], strides = [1, 1]} : vector<8x32xbf16> to vector<8x8xbf16>
    %30 = vector.shape_cast %29 : vector<8x8xbf16> to vector<1x8x8xbf16>
    "tpu.trace_start"() <{level = 10 : i32, message = "bqd,bkd->bqk"}> : () -> ()
    %cst_21 = arith.constant dense<0.000000e+00> : vector<1x8x8xf32>
    %31 = tpu.matmul %26, %28, %cst_21 {dimension_numbers = #tpu.dot_dimension_numbers<[2], [2], [1], [1], [0, 0, 0, 1, 1, 1], [0], [0]>} : vector<1x8x8xbf16>, vector<1x8x8xbf16>, vector<1x8x8xf32> -> vector<1x8x8xf32>
    "tpu.trace_stop"() : () -> ()
    %cst_22 = arith.constant dense<0xFF800000> : vector<1x8xf32>
    %32 = vector.multi_reduction <maximumf>, %31, %cst_22 [2] : vector<1x8x8xf32> to vector<1x8xf32>
    %33 = vector.shape_cast %32 : vector<1x8xf32> to vector<1x8x1xf32>
    %34 = vector.broadcast %33 : vector<1x8x1xf32> to vector<1x8x8xf32>
    %35 = arith.subf %31, %34 : vector<1x8x8xf32>
    %36 = math.exp %35 : vector<1x8x8xf32>
    %cst_23 = arith.constant dense<0.000000e+00> : vector<1x8xf32>
    %37 = vector.multi_reduction <add>, %36, %cst_23 [2] : vector<1x8x8xf32> to vector<1x8xf32>
    %38 = vector.shape_cast %37 : vector<1x8xf32> to vector<1x8x1xf32>
    %39 = tpu.reciprocal %38 {approx = true} : vector<1x8x1xf32> -> vector<1x8x1xf32>
    %40 = vector.broadcast %39 : vector<1x8x1xf32> to vector<1x8x8xf32>
    %41 = arith.mulf %36, %40 : vector<1x8x8xf32>
    %42 = arith.truncf %41 : vector<1x8x8xf32> to vector<1x8x8xbf16>
    "tpu.trace_start"() <{level = 10 : i32, message = "bqk,bkd->bqd"}> : () -> ()
    %cst_24 = arith.constant dense<0.000000e+00> : vector<1x8x8xf32>
    %43 = tpu.matmul %42, %30, %cst_24 {dimension_numbers = #tpu.dot_dimension_numbers<[2], [1], [1], [2], [0, 0, 0, 1, 1, 2], [0], [0]>} : vector<1x8x8xbf16>, vector<1x8x8xbf16>, vector<1x8x8xf32> -> vector<1x8x8xf32>
    "tpu.trace_stop"() : () -> ()
    %44 = vector.shape_cast %43 : vector<1x8x8xf32> to vector<8x8xf32>
    %45 = vector.extract_strided_slice %22 {offsets = [0, 8], sizes = [8, 8], strides = [1, 1]} : vector<8x32xbf16> to vector<8x8xbf16>
    %46 = vector.shape_cast %45 : vector<8x8xbf16> to vector<1x8x8xbf16>
    %47 = vector.extract_strided_slice %23 {offsets = [0, 8], sizes = [8, 8], strides = [1, 1]} : vector<8x32xbf16> to vector<8x8xbf16>
    %48 = vector.shape_cast %47 : vector<8x8xbf16> to vector<1x8x8xbf16>
    %49 = vector.extract_strided_slice %24 {offsets = [0, 8], sizes = [8, 8], strides = [1, 1]} : vector<8x32xbf16> to vector<8x8xbf16>
    %50 = vector.shape_cast %49 : vector<8x8xbf16> to vector<1x8x8xbf16>
    "tpu.trace_start"() <{level = 10 : i32, message = "bqd,bkd->bqk"}> : () -> ()
    %cst_25 = arith.constant dense<0.000000e+00> : vector<1x8x8xf32>
    %51 = tpu.matmul %46, %48, %cst_25 {dimension_numbers = #tpu.dot_dimension_numbers<[2], [2], [1], [1], [0, 0, 0, 1, 1, 1], [0], [0]>} : vector<1x8x8xbf16>, vector<1x8x8xbf16>, vector<1x8x8xf32> -> vector<1x8x8xf32>
    "tpu.trace_stop"() : () -> ()
    %cst_26 = arith.constant dense<0xFF800000> : vector<1x8xf32>
    %52 = vector.multi_reduction <maximumf>, %51, %cst_26 [2] : vector<1x8x8xf32> to vector<1x8xf32>
    %53 = vector.shape_cast %52 : vector<1x8xf32> to vector<1x8x1xf32>
    %54 = vector.broadcast %53 : vector<1x8x1xf32> to vector<1x8x8xf32>
    %55 = arith.subf %51, %54 : vector<1x8x8xf32>
    %56 = math.exp %55 : vector<1x8x8xf32>
    %cst_27 = arith.constant dense<0.000000e+00> : vector<1x8xf32>
    %57 = vector.multi_reduction <add>, %56, %cst_27 [2] : vector<1x8x8xf32> to vector<1x8xf32>
    %58 = vector.shape_cast %57 : vector<1x8xf32> to vector<1x8x1xf32>
    %59 = tpu.reciprocal %58 {approx = true} : vector<1x8x1xf32> -> vector<1x8x1xf32>
    %60 = vector.broadcast %59 : vector<1x8x1xf32> to vector<1x8x8xf32>
    %61 = arith.mulf %56, %60 : vector<1x8x8xf32>
    %62 = arith.truncf %61 : vector<1x8x8xf32> to vector<1x8x8xbf16>
    "tpu.trace_start"() <{level = 10 : i32, message = "bqk,bkd->bqd"}> : () -> ()
    %cst_28 = arith.constant dense<0.000000e+00> : vector<1x8x8xf32>
    %63 = tpu.matmul %62, %50, %cst_28 {dimension_numbers = #tpu.dot_dimension_numbers<[2], [1], [1], [2], [0, 0, 0, 1, 1, 2], [0], [0]>} : vector<1x8x8xbf16>, vector<1x8x8xbf16>, vector<1x8x8xf32> -> vector<1x8x8xf32>
    "tpu.trace_stop"() : () -> ()
    %64 = vector.shape_cast %63 : vector<1x8x8xf32> to vector<8x8xf32>
    %65 = vector.extract_strided_slice %22 {offsets = [0, 16], sizes = [8, 8], strides = [1, 1]} : vector<8x32xbf16> to vector<8x8xbf16>
    %66 = vector.shape_cast %65 : vector<8x8xbf16> to vector<1x8x8xbf16>
    %67 = vector.extract_strided_slice %23 {offsets = [0, 16], sizes = [8, 8], strides = [1, 1]} : vector<8x32xbf16> to vector<8x8xbf16>
    %68 = vector.shape_cast %67 : vector<8x8xbf16> to vector<1x8x8xbf16>
    %69 = vector.extract_strided_slice %24 {offsets = [0, 16], sizes = [8, 8], strides = [1, 1]} : vector<8x32xbf16> to vector<8x8xbf16>
    %70 = vector.shape_cast %69 : vector<8x8xbf16> to vector<1x8x8xbf16>
    "tpu.trace_start"() <{level = 10 : i32, message = "bqd,bkd->bqk"}> : () -> ()
    %cst_29 = arith.constant dense<0.000000e+00> : vector<1x8x8xf32>
    %71 = tpu.matmul %66, %68, %cst_29 {dimension_numbers = #tpu.dot_dimension_numbers<[2], [2], [1], [1], [0, 0, 0, 1, 1, 1], [0], [0]>} : vector<1x8x8xbf16>, vector<1x8x8xbf16>, vector<1x8x8xf32> -> vector<1x8x8xf32>
    "tpu.trace_stop"() : () -> ()
    %cst_30 = arith.constant dense<0xFF800000> : vector<1x8xf32>
    %72 = vector.multi_reduction <maximumf>, %71, %cst_30 [2] : vector<1x8x8xf32> to vector<1x8xf32>
    %73 = vector.shape_cast %72 : vector<1x8xf32> to vector<1x8x1xf32>
    %74 = vector.broadcast %73 : vector<1x8x1xf32> to vector<1x8x8xf32>
    %75 = arith.subf %71, %74 : vector<1x8x8xf32>
    %76 = math.exp %75 : vector<1x8x8xf32>
    %cst_31 = arith.constant dense<0.000000e+00> : vector<1x8xf32>
    %77 = vector.multi_reduction <add>, %76, %cst_31 [2] : vector<1x8x8xf32> to vector<1x8xf32>
    %78 = vector.shape_cast %77 : vector<1x8xf32> to vector<1x8x1xf32>
    %79 = tpu.reciprocal %78 {approx = true} : vector<1x8x1xf32> -> vector<1x8x1xf32>
    %80 = vector.broadcast %79 : vector<1x8x1xf32> to vector<1x8x8xf32>
    %81 = arith.mulf %76, %80 : vector<1x8x8xf32>
    %82 = arith.truncf %81 : vector<1x8x8xf32> to vector<1x8x8xbf16>
    "tpu.trace_start"() <{level = 10 : i32, message = "bqk,bkd->bqd"}> : () -> ()
    %cst_32 = arith.constant dense<0.000000e+00> : vector<1x8x8xf32>
    %83 = tpu.matmul %82, %70, %cst_32 {dimension_numbers = #tpu.dot_dimension_numbers<[2], [1], [1], [2], [0, 0, 0, 1, 1, 2], [0], [0]>} : vector<1x8x8xbf16>, vector<1x8x8xbf16>, vector<1x8x8xf32> -> vector<1x8x8xf32>
    "tpu.trace_stop"() : () -> ()
    %84 = vector.shape_cast %83 : vector<1x8x8xf32> to vector<8x8xf32>
    %85 = vector.extract_strided_slice %22 {offsets = [0, 24], sizes = [8, 8], strides = [1, 1]} : vector<8x32xbf16> to vector<8x8xbf16>
    %86 = vector.shape_cast %85 : vector<8x8xbf16> to vector<1x8x8xbf16>
    %87 = vector.extract_strided_slice %23 {offsets = [0, 24], sizes = [8, 8], strides = [1, 1]} : vector<8x32xbf16> to vector<8x8xbf16>
    %88 = vector.shape_cast %87 : vector<8x8xbf16> to vector<1x8x8xbf16>
    %89 = vector.extract_strided_slice %24 {offsets = [0, 24], sizes = [8, 8], strides = [1, 1]} : vector<8x32xbf16> to vector<8x8xbf16>
    %90 = vector.shape_cast %89 : vector<8x8xbf16> to vector<1x8x8xbf16>
    "tpu.trace_start"() <{level = 10 : i32, message = "bqd,bkd->bqk"}> : () -> ()
    %cst_33 = arith.constant dense<0.000000e+00> : vector<1x8x8xf32>
    %91 = tpu.matmul %86, %88, %cst_33 {dimension_numbers = #tpu.dot_dimension_numbers<[2], [2], [1], [1], [0, 0, 0, 1, 1, 1], [0], [0]>} : vector<1x8x8xbf16>, vector<1x8x8xbf16>, vector<1x8x8xf32> -> vector<1x8x8xf32>
    "tpu.trace_stop"() : () -> ()
    %cst_34 = arith.constant dense<0xFF800000> : vector<1x8xf32>
    %92 = vector.multi_reduction <maximumf>, %91, %cst_34 [2] : vector<1x8x8xf32> to vector<1x8xf32>
    %93 = vector.shape_cast %92 : vector<1x8xf32> to vector<1x8x1xf32>
    %94 = vector.broadcast %93 : vector<1x8x1xf32> to vector<1x8x8xf32>
    %95 = arith.subf %91, %94 : vector<1x8x8xf32>
    %96 = math.exp %95 : vector<1x8x8xf32>
    %cst_35 = arith.constant dense<0.000000e+00> : vector<1x8xf32>
    %97 = vector.multi_reduction <add>, %96, %cst_35 [2] : vector<1x8x8xf32> to vector<1x8xf32>
    %98 = vector.shape_cast %97 : vector<1x8xf32> to vector<1x8x1xf32>
    %99 = tpu.reciprocal %98 {approx = true} : vector<1x8x1xf32> -> vector<1x8x1xf32>
    %100 = vector.broadcast %99 : vector<1x8x1xf32> to vector<1x8x8xf32>
    %101 = arith.mulf %96, %100 : vector<1x8x8xf32>
    %102 = arith.truncf %101 : vector<1x8x8xf32> to vector<1x8x8xbf16>
    "tpu.trace_start"() <{level = 10 : i32, message = "bqk,bkd->bqd"}> : () -> ()
    %cst_36 = arith.constant dense<0.000000e+00> : vector<1x8x8xf32>
    %103 = tpu.matmul %102, %90, %cst_36 {dimension_numbers = #tpu.dot_dimension_numbers<[2], [1], [1], [2], [0, 0, 0, 1, 1, 2], [0], [0]>} : vector<1x8x8xbf16>, vector<1x8x8xbf16>, vector<1x8x8xf32> -> vector<1x8x8xf32>
    "tpu.trace_stop"() : () -> ()
    %104 = vector.shape_cast %103 : vector<1x8x8xf32> to vector<8x8xf32>
    %105 = tpu.concatenate %44, %64, %84, %104 in 1 : vector<8x8xf32>, vector<8x8xf32>, vector<8x8xf32>, vector<8x8xf32> -> vector<8x32xf32>
    %106 = arith.truncf %105 : vector<8x32xf32> to vector<8x32xbf16>
    %c0_37 = arith.constant 0 : index
    %c0_38 = arith.constant 0 : index
    %107 = vector.load %arg10[%c0_37, %c0_38] : memref<32x32xbf16, #tpu.memory_space<vmem>>, vector<32x32xbf16>
    %cst_39 = arith.constant dense<0.000000e+00> : vector<8x32xf32>
    %108 = tpu.matmul %106, %107, %cst_39 {dimension_numbers = #tpu.dot_dimension_numbers<[1], [0], [0], [1], [0, 0, 1, 1], [], []>} : vector<8x32xbf16>, vector<32x32xbf16>, vector<8x32xf32> -> vector<8x32xf32>
    %c0_40 = arith.constant 0 : index
    %c0_41 = arith.constant 0 : index
    %109 = vector.load %arg11[%c0_40, %c0_41] : memref<1x32xf32, #tpu.memory_space<vmem>>, vector<1x32xf32>
    %110 = vector.broadcast %109 : vector<1x32xf32> to vector<8x32xf32>
    %111 = arith.addf %108, %110 : vector<8x32xf32>
    %112 = arith.addf %111, %0 : vector<8x32xf32>
    %c0_42 = arith.constant 0 : index
    %c0_43 = arith.constant 0 : index
    %113 = vector.load %arg12[%c0_42, %c0_43] : memref<1x32xf32, #tpu.memory_space<vmem>>, vector<1x32xf32>
    %c0_44 = arith.constant 0 : index
    %c0_45 = arith.constant 0 : index
    %114 = vector.load %arg13[%c0_44, %c0_45] : memref<1x32xf32, #tpu.memory_space<vmem>>, vector<1x32xf32>
    %cst_46 = arith.constant dense<0.000000e+00> : vector<8xf32>
    %115 = vector.multi_reduction <add>, %112, %cst_46 [1] : vector<8x32xf32> to vector<8xf32>
    %116 = vector.shape_cast %115 : vector<8xf32> to vector<8x1xf32>
    %cst_47 = arith.constant 3.200000e+01 : f32
    %117 = vector.broadcast %cst_47 : f32 to vector<8x1xf32>
    %118 = arith.divf %116, %117 : vector<8x1xf32>
    %119 = vector.broadcast %118 : vector<8x1xf32> to vector<8x32xf32>
    %120 = arith.subf %112, %119 : vector<8x32xf32>
    %121 = arith.mulf %120, %120 : vector<8x32xf32>
    %cst_48 = arith.constant dense<0.000000e+00> : vector<8xf32>
    %122 = vector.multi_reduction <add>, %121, %cst_48 [1] : vector<8x32xf32> to vector<8xf32>
    %123 = vector.shape_cast %122 : vector<8xf32> to vector<8x1xf32>
    %cst_49 = arith.constant 3.200000e+01 : f32
    %124 = vector.broadcast %cst_49 : f32 to vector<8x1xf32>
    %125 = arith.divf %123, %124 : vector<8x1xf32>
    %126 = vector.broadcast %118 : vector<8x1xf32> to vector<8x32xf32>
    %127 = arith.subf %112, %126 : vector<8x32xf32>
    %cst_50 = arith.constant 9.99999974E-6 : f32
    %128 = vector.broadcast %cst_50 : f32 to vector<8x1xf32>
    %129 = arith.addf %125, %128 : vector<8x1xf32>
    %130 = math.rsqrt %129 : vector<8x1xf32>
    %131 = vector.broadcast %130 : vector<8x1xf32> to vector<8x32xf32>
    %132 = arith.mulf %127, %131 : vector<8x32xf32>
    %133 = vector.broadcast %113 : vector<1x32xf32> to vector<8x32xf32>
    %134 = arith.mulf %132, %133 : vector<8x32xf32>
    %135 = vector.broadcast %114 : vector<1x32xf32> to vector<8x32xf32>
    %136 = arith.addf %134, %135 : vector<8x32xf32>
    %137 = arith.truncf %136 : vector<8x32xf32> to vector<8x32xbf16>
    %c0_51 = arith.constant 0 : index
    %c0_52 = arith.constant 0 : index
    %138 = vector.load %arg14[%c0_51, %c0_52] : memref<32x32xbf16, #tpu.memory_space<vmem>>, vector<32x32xbf16>
    %cst_53 = arith.constant dense<0.000000e+00> : vector<8x32xf32>
    %139 = tpu.matmul %137, %138, %cst_53 {dimension_numbers = #tpu.dot_dimension_numbers<[1], [0], [0], [1], [0, 0, 1, 1], [], []>} : vector<8x32xbf16>, vector<32x32xbf16>, vector<8x32xf32> -> vector<8x32xf32>
    %c0_54 = arith.constant 0 : index
    %c0_55 = arith.constant 0 : index
    %140 = vector.load %arg15[%c0_54, %c0_55] : memref<1x32xf32, #tpu.memory_space<vmem>>, vector<1x32xf32>
    %141 = vector.broadcast %140 : vector<1x32xf32> to vector<8x32xf32>
    %142 = arith.addf %139, %141 : vector<8x32xf32>
    %cst_56 = arith.constant 0.000000e+00 : f32
    %143 = vector.broadcast %cst_56 : f32 to vector<8x32xf32>
    %144 = arith.maximumf %142, %143 : vector<8x32xf32>
    %145 = arith.truncf %144 : vector<8x32xf32> to vector<8x32xbf16>
    %c0_57 = arith.constant 0 : index
    %c0_58 = arith.constant 0 : index
    %146 = vector.load %arg16[%c0_57, %c0_58] : memref<32x32xbf16, #tpu.memory_space<vmem>>, vector<32x32xbf16>
    %cst_59 = arith.constant dense<0.000000e+00> : vector<8x32xf32>
    %147 = tpu.matmul %145, %146, %cst_59 {dimension_numbers = #tpu.dot_dimension_numbers<[1], [0], [0], [1], [0, 0, 1, 1], [], []>} : vector<8x32xbf16>, vector<32x32xbf16>, vector<8x32xf32> -> vector<8x32xf32>
    %c0_60 = arith.constant 0 : index
    %c0_61 = arith.constant 0 : index
    %148 = vector.load %arg17[%c0_60, %c0_61] : memref<1x32xf32, #tpu.memory_space<vmem>>, vector<1x32xf32>
    %149 = vector.broadcast %148 : vector<1x32xf32> to vector<8x32xf32>
    %150 = arith.addf %147, %149 : vector<8x32xf32>
    %151 = arith.addf %150, %0 : vector<8x32xf32>
    %c0_62 = arith.constant 0 : index
    %c0_63 = arith.constant 0 : index
    %152 = vector.load %arg18[%c0_62, %c0_63] : memref<1x32xf32, #tpu.memory_space<vmem>>, vector<1x32xf32>
    %c0_64 = arith.constant 0 : index
    %c0_65 = arith.constant 0 : index
    %153 = vector.load %arg19[%c0_64, %c0_65] : memref<1x32xf32, #tpu.memory_space<vmem>>, vector<1x32xf32>
    %cst_66 = arith.constant dense<0.000000e+00> : vector<8xf32>
    %154 = vector.multi_reduction <add>, %151, %cst_66 [1] : vector<8x32xf32> to vector<8xf32>
    %155 = vector.shape_cast %154 : vector<8xf32> to vector<8x1xf32>
    %cst_67 = arith.constant 3.200000e+01 : f32
    %156 = vector.broadcast %cst_67 : f32 to vector<8x1xf32>
    %157 = arith.divf %155, %156 : vector<8x1xf32>
    %158 = vector.broadcast %157 : vector<8x1xf32> to vector<8x32xf32>
    %159 = arith.subf %151, %158 : vector<8x32xf32>
    %160 = arith.mulf %159, %159 : vector<8x32xf32>
    %cst_68 = arith.constant dense<0.000000e+00> : vector<8xf32>
    %161 = vector.multi_reduction <add>, %160, %cst_68 [1] : vector<8x32xf32> to vector<8xf32>
    %162 = vector.shape_cast %161 : vector<8xf32> to vector<8x1xf32>
    %cst_69 = arith.constant 3.200000e+01 : f32
    %163 = vector.broadcast %cst_69 : f32 to vector<8x1xf32>
    %164 = arith.divf %162, %163 : vector<8x1xf32>
    %165 = vector.broadcast %157 : vector<8x1xf32> to vector<8x32xf32>
    %166 = arith.subf %151, %165 : vector<8x32xf32>
    %cst_70 = arith.constant 9.99999974E-6 : f32
    %167 = vector.broadcast %cst_70 : f32 to vector<8x1xf32>
    %168 = arith.addf %164, %167 : vector<8x1xf32>
    %169 = math.rsqrt %168 : vector<8x1xf32>
    %170 = vector.broadcast %169 : vector<8x1xf32> to vector<8x32xf32>
    %171 = arith.mulf %166, %170 : vector<8x32xf32>
    %172 = vector.broadcast %152 : vector<1x32xf32> to vector<8x32xf32>
    %173 = arith.mulf %171, %172 : vector<8x32xf32>
    %174 = vector.broadcast %153 : vector<1x32xf32> to vector<8x32xf32>
    %175 = arith.addf %173, %174 : vector<8x32xf32>
    %c0_71 = arith.constant 0 : index
    %c0_72 = arith.constant 0 : index
    %176 = vector.load %arg20[%c0_71, %c0_72] : memref<8x32xf32, #tpu.memory_space<vmem>>, vector<8x32xf32>
    tpu.vector_store %arg20[%c0_71, %c0_72], %175 {strides = array<i32>} : memref<8x32xf32, #tpu.memory_space<vmem>>, vector<8x32xf32>,
    return
  }
  func.func @transform_0(%arg0: i32) -> (i32, i32) {
    %c0_i32 = arith.constant 0 : i32
    %c0_i32_0 = arith.constant 0 : i32
    return %arg0, %c0_i32 : i32, i32
  }
  func.func @transform_1(%arg0: i32) -> (i32, i32) {
    %c0_i32 = arith.constant 0 : i32
    %c0_i32_0 = arith.constant 0 : i32
    return %arg0, %c0_i32 : i32, i32
  }
  func.func @transform_2(%arg0: i32) -> (i32, i32) {
    %c0_i32 = arith.constant 0 : i32
    %c0_i32_0 = arith.constant 0 : i32
    return %arg0, %c0_i32 : i32, i32
  }
  func.func @transform_3(%arg0: i32) -> (i32, i32) {
    %c0_i32 = arith.constant 0 : i32
    %c0_i32_0 = arith.constant 0 : i32
    %c0_i32_1 = arith.constant 0 : i32
    return %c0_i32, %c0_i32_0 : i32, i32
  }
  func.func @transform_4(%arg0: i32) -> (i32, i32) {
    %c0_i32 = arith.constant 0 : i32
    %c0_i32_0 = arith.constant 0 : i32
    %c0_i32_1 = arith.constant 0 : i32
    return %c0_i32, %c0_i32_0 : i32, i32
  }
  func.func @transform_5(%arg0: i32) -> (i32, i32) {
    %c0_i32 = arith.constant 0 : i32
    %c0_i32_0 = arith.constant 0 : i32
    %c0_i32_1 = arith.constant 0 : i32
    return %c0_i32, %c0_i32_0 : i32, i32
  }
  func.func @transform_6(%arg0: i32) -> (i32, i32) {
    %c0_i32 = arith.constant 0 : i32
    %c0_i32_0 = arith.constant 0 : i32
    %c0_i32_1 = arith.constant 0 : i32
    return %c0_i32, %c0_i32_0 : i32, i32
  }
  func.func @transform_7(%arg0: i32) -> (i32, i32) {
    %c0_i32 = arith.constant 0 : i32
    %c0_i32_0 = arith.constant 0 : i32
    %c0_i32_1 = arith.constant 0 : i32
    return %c0_i32, %c0_i32_0 : i32, i32
  }
  func.func @transform_8(%arg0: i32) -> (i32, i32) {
    %c0_i32 = arith.constant 0 : i32
    %c0_i32_0 = arith.constant 0 : i32
    %c0_i32_1 = arith.constant 0 : i32
    return %c0_i32, %c0_i32_0 : i32, i32
  }
  func.func @transform_9(%arg0: i32) -> (i32, i32) {
    %c0_i32 = arith.constant 0 : i32
    %c0_i32_0 = arith.constant 0 : i32
    %c0_i32_1 = arith.constant 0 : i32
    return %c0_i32, %c0_i32_0 : i32, i32
  }
  func.func @transform_10(%arg0: i32) -> (i32, i32) {
    %c0_i32 = arith.constant 0 : i32
    %c0_i32_0 = arith.constant 0 : i32
    %c0_i32_1 = arith.constant 0 : i32
    return %c0_i32, %c0_i32_0 : i32, i32
  }
  func.func @transform_11(%arg0: i32) -> (i32, i32) {
    %c0_i32 = arith.constant 0 : i32
    %c0_i32_0 = arith.constant 0 : i32
    %c0_i32_1 = arith.constant 0 : i32
    return %c0_i32, %c0_i32_0 : i32, i32
  }
  func.func @transform_12(%arg0: i32) -> (i32, i32) {
    %c0_i32 = arith.constant 0 : i32
    %c0_i32_0 = arith.constant 0 : i32
    %c0_i32_1 = arith.constant 0 : i32
    return %c0_i32, %c0_i32_0 : i32, i32
  }
  func.func @transform_13(%arg0: i32) -> (i32, i32) {
    %c0_i32 = arith.constant 0 : i32
    %c0_i32_0 = arith.constant 0 : i32
    %c0_i32_1 = arith.constant 0 : i32
    return %c0_i32, %c0_i32_0 : i32, i32
  }
  func.func @transform_14(%arg0: i32) -> (i32, i32) {
    %c0_i32 = arith.constant 0 : i32
    %c0_i32_0 = arith.constant 0 : i32
    %c0_i32_1 = arith.constant 0 : i32
    return %c0_i32, %c0_i32_0 : i32, i32
  }
  func.func @transform_15(%arg0: i32) -> (i32, i32) {
    %c0_i32 = arith.constant 0 : i32
    %c0_i32_0 = arith.constant 0 : i32
    %c0_i32_1 = arith.constant 0 : i32
    return %c0_i32, %c0_i32_0 : i32, i32
  }
  func.func @transform_16(%arg0: i32) -> (i32, i32) {
    %c0_i32 = arith.constant 0 : i32
    %c0_i32_0 = arith.constant 0 : i32
    %c0_i32_1 = arith.constant 0 : i32
    return %c0_i32, %c0_i32_0 : i32, i32
  }
  func.func @transform_17(%arg0: i32) -> (i32, i32) {
    %c0_i32 = arith.constant 0 : i32
    %c0_i32_0 = arith.constant 0 : i32
    %c0_i32_1 = arith.constant 0 : i32
    return %c0_i32, %c0_i32_0 : i32, i32
  }
  func.func @transform_18(%arg0: i32) -> (i32, i32) {
    %c0_i32 = arith.constant 0 : i32
    %c0_i32_0 = arith.constant 0 : i32
    %c0_i32_1 = arith.constant 0 : i32
    return %c0_i32, %c0_i32_0 : i32, i32
  }
  func.func @transform_19(%arg0: i32) -> (i32, i32) {
    %c0_i32 = arith.constant 0 : i32
    %c0_i32_0 = arith.constant 0 : i32
    return %arg0, %c0_i32 : i32, i32
  }
}

</mosaic_0001>

<bundles_post_ra>
// kernel: tpu_custom_call.1
= control target key start
LH: loop header
LB: loop body
LE: loop exit
PB: predicated region body
PF: predicated region fallthrough
CT: control target
= control target key end

     0   :  { %s4072_s0 = inlined_call_operand.hbm [shape: f32[16,32], index: 0, kind: input, shape index: {}]   ;;  %s4073_s1 = inlined_call_operand.hbm [shape: f32[16,32], index: 1, kind: input, shape index: {}]   ;;  %s4074_s2 = inlined_call_operand.hbm [shape: f32[16,32], index: 2, kind: input, shape index: {}]   ;;  %s4075_s3 = inlined_call_operand.hbm [shape: bf16[32,32], index: 3, kind: input, shape index: {}]   ;;  %s4076_s4 = inlined_call_operand.hbm [shape: f32[1,32], index: 4, kind: input, shape index: {}]   ;;  %s4077_s5 = inlined_call_operand.hbm [shape: bf16[32,32], index: 5, kind: input, shape index: {}]   ;;  %s4078_s6 = inlined_call_operand.hbm [shape: f32[1,32], index: 6, kind: input, shape index: {}]   ;;  %s4079_s7 = inlined_call_operand.hbm [shape: bf16[32,32], index: 7, kind: input, shape index: {}]   ;;  %s4080_s8 = inlined_call_operand.hbm [shape: f32[1,32], index: 8, kind: input, shape index: {}]   ;;  %s4081_s9 = inlined_call_operand.hbm [shape: bf16[32,32], index: 9, kind: input, shape index: {}]   ;;  %s4082_s10 = inlined_call_operand.hbm [shape: f32[1,32], index: 10, kind: input, shape index: {}]   ;;  %s4083_s11 = inlined_call_operand.hbm [shape: f32[1,32], index: 11, kind: input, shape index: {}]   ;;  %s4084_s12 = inlined_call_operand.hbm [shape: f32[1,32], index: 12, kind: input, shape index: {}]   ;;  %s4085_s13 = inlined_call_operand.hbm [shape: bf16[32,32], index: 13, kind: input, shape index: {}]   ;;  %s4086_s14 = inlined_call_operand.hbm [shape: f32[1,32], index: 14, kind: input, shape index: {}]   ;;  %s4087_s15 = inlined_call_operand.hbm [shape: bf16[32,32], index: 15, kind: input, shape index: {}]   ;;  %s4088_s16 = inlined_call_operand.hbm [shape: f32[1,32], index: 16, kind: input, shape index: {}]   ;;  %s4089_s17 = inlined_call_operand.hbm [shape: f32[1,32], index: 17, kind: input, shape index: {}]   ;;  %s4090_s18 = inlined_call_operand.hbm [shape: f32[1,32], index: 18, kind: input, shape index: {}]   ;;  %s4091_s19 = inlined_call_operand.hbm [shape: f32[16,32], index: 19, kind: output, shape index: {}]  }
   0x1   :  { %4122 = sst [smem:[#allocation46_spill]] %s4072_s0 }
   0x2   :  { %4123 = sst [smem:[#allocation47_spill]] %s4073_s1 }
   0x3   :  { %4124 = sst [smem:[#allocation48_spill]] %s4074_s2 }
   0x4   :  { %4125 = sst [smem:[#allocation49_spill]] %s4075_s3 }
   0x5   :  { %4126 = sst [smem:[#allocation50_spill]] %s4076_s4 }
   0x6   :  { %4127 = sst [smem:[#allocation51_spill]] %s4077_s5 }
   0x7   :  { %4128 = sst [smem:[#allocation52_spill]] %s4078_s6 }
   0x8   :  { %4129 = sst [smem:[#allocation53_spill]] %s4079_s7 }
   0x9   :  { %4130 = sst [smem:[#allocation54_spill]] %s4080_s8 }
   0xa   :  { %4131 = sst [smem:[#allocation55_spill]] %s4081_s9 }
   0xb   :  { %4132 = sst [smem:[#allocation56_spill]] %s4082_s10 }
   0xc   :  { %4133 = sst [smem:[#allocation57_spill]] %s4083_s11 }
   0xd   :  { %4134 = sst [smem:[#allocation58_spill]] %s4084_s12 }
   0xe   :  { %4135 = sst [smem:[#allocation59_spill]] %s4085_s13 }
   0xf   :  { %4136 = sst [smem:[#allocation60_spill]] %s4086_s14 }
  0x10   :  { %4137 = sst [smem:[#allocation61_spill]] %s4087_s15 }
  0x11   :  { %4138 = sst [smem:[#allocation62_spill]] %s4088_s16 }
  0x12   :  { %4139 = sst [smem:[#allocation63_spill]] %s4089_s17 }
  0x13   :  { %4140 = sst [smem:[#allocation64_spill]] %s4090_s18 }
  0x14   :  { %4141 = sst [smem:[#allocation65_spill]] %s4091_s19 }
  0x15   :  { %24 = vsyncpa [#allocation3], 0 }
  0x16   :  { %26 = vsyncpa [#allocation3 + $0x1], 0 }
  0x17   :  { %27 = vsyncpa [#allocation6], 0 }
  0x18   :  { %29 = vsyncpa [#allocation6 + $0x1], 0 }
  0x19   :  { %30 = vsyncpa [#allocation9], 0 }
  0x1a   :  { %31 = vsyncpa [#allocation12], 0 }
  0x1b   :  { %32 = vsyncpa [#allocation15], 0 }
  0x1c   :  { %33 = vsyncpa [#allocation18], 0 }
  0x1d   :  { %34 = vsyncpa [#allocation21], 0 }
  0x1e   :  { %35 = vsyncpa [#allocation24], 0 }
  0x1f   :  { %36 = vsyncpa [#allocation27], 0 }
  0x20   :  { %37 = vsyncpa [#allocation30], 0 }
  0x21   :  { %38 = vsyncpa [#allocation4], 0 }
  0x22   :  { %40 = vsyncpa [#allocation4 + $0x1], 0  ;;  %s3356_s0 = smov 0   ;;  %s3358_s30 = smov 0  }
  0x23   :  { %s3360_s20 = smov 0   ;;  %s3362_s21 = smov 0  }
  0x24 LB: > { %s3226_s1 = smov [#allocation8]   ;;  %s3377_s2 = sadd.s32 4294967295, %s3224_s21   ;;  %s3224_s21 = sphi %s3362_s21, %s4205_s21   ;;  %s3220_s20 = sphi %s3360_s20, %s4204_s20   ;;  %s3216_s30 = sphi %s3358_s30, %s4203_s30   ;;  %s3212_s0 = sphi %s3356_s0, %s4202_s0  }
  0x25   : > { %s503_s22 = sshll.u32 %s3226_s1, 4  ;;  %p2110_p0 = scmp.ge.s32.totalorder %s3224_s21, 1  ;;  %s3382_s22 = int_to_ptr.vmem [resolvable:$true] %s503_s22 }
  0x26   : > { %p4105_p1 = scmp.eq.s32.totalorder %s3377_s2, 0  ;;  %p491_p2 = scmp.lt.s32.totalorder %s3224_s21, 3 }
  0x27   : > { %s3227_s24 = smov [#allocation11]   ;;  %s3228_s26 = smov [#allocation14]  }
  0x28   : > { %p3384_p3 = pnand %p2110_p0, %p491_p2  ;;  %s527_s25 = sshll.u32 %s3227_s24, 4  ;;  %s3397_s25 = int_to_ptr.vmem [resolvable:$true] %s527_s25 }
  0x29   : > { %s551_s27 = sshll.u32 %s3228_s26, 4  ;;  %s4145_s1 = sld [smem:[#allocation49_spill]]  ;;  %s3399_s27 = int_to_ptr.vmem [resolvable:$true] %s551_s27 }
  0x2a   : > { %s4142_s23 = scalar_select %p3384_p3, 1, 0 }
  0x2b   : > { %p2397_p5 = pneg %p3384_p3 }
  0x2c   : > { %4143 = sst [smem:[#allocation44_spill]] %s4142_s23 }
  0x2d   : > { %p3393_p6 = pnand %p2397_p5, %p4105_p1 }
  0x2f   : > { %s4144_s3 = scalar_select %p3393_p6, 1, 0 }
  0x30   : > { %s2584_s19 = scalar_lea.hbm %s4145_s1, 256  ;;  %p3409_p8 = pneg %p3393_p6 }
  0x31   : > { %p2585_p7 = scmp.ne.s32.totalorder %s4145_s1, %s2584_s19  ;;  %p2591_p11 = scmp.lt.u32.totalorder %s2584_s19, %s4145_s1 }
  0x32   : > { %s4146_s24 = scalar_select %p3409_p8, 1, 0 }
  0x33   : > { %p2587_p9 = pnand %p3409_p8, %p2585_p7 }
  0x35   : > { %p2588_p10 = pneg %p2587_p9 }
  0x37   : > { %p2593_p12 = pnand %p2591_p11, %p2588_p10 }
  0x39   : > { %2596 = shalt.err (!%p2593_p12)
}
  0x3a   : > { %s2597_s18 = scalar_lea.vmem %s3382_s22, 256  ;;  %p2605_p5 = scmp.lt.s32.totalorder %s3382_s22, %s3382_s22 }
  0x3b   : > { %p2598_p13 = scmp.ne.s32.totalorder %s3382_s22, %s2597_s18  ;;  %p2606_p4 = scmp.lt.s32.totalorder %s2597_s18, %s2597_s18 }
  0x3d   : > { %p2600_p0 = pnand %p2598_p13, %p3409_p8  ;;  %p2607_p7 = por %p2606_p4, %p2605_p5 }
  0x3f   : > { %p2601_p2 = pneg %p2600_p0 }
  0x41   : > { %p2608_p9 = pnand %p2607_p7, %p2601_p2 }
  0x43   : > { %2611 = shalt.err (!%p2608_p9)
}
  0x44   : > { %s3229_s23 = smov 64   ;;  %s3230_s16 = smov 4  }
  0x45   : > { %2400 = dma.hbm_to_vmem [thread:$0]  (!%p3393_p6), %s4145_s1, 256, %s3382_s22, [#allocation9], %s3229_s23, %s3229_s23, %s3230_s16  }
  0x46   : > { %s4147_s5 = sld [smem:[#allocation51_spill]] }
  0x4c   : > { %s2612_s18 = scalar_lea.hbm %s4147_s5, 256 }
  0x4d   : > { %p2613_p4 = scmp.ne.s32.totalorder %s4147_s5, %s2612_s18  ;;  %p2619_p12 = scmp.lt.u32.totalorder %s2612_s18, %s4147_s5 }
  0x4f   : > { %p2615_p10 = pnand %p2613_p4, %p3409_p8 }
  0x51   : > { %p2616_p11 = pneg %p2615_p10 }
  0x53   : > { %p2621_p13 = pnand %p2619_p12, %p2616_p11 }
  0x55   : > { %2624 = shalt.err (!%p2621_p13)
}
  0x56   : > { %s2625_s22 = scalar_lea.vmem %s3397_s25, 256  ;;  %p2633_p7 = scmp.lt.s32.totalorder %s3397_s25, %s3397_s25 }
  0x57   : > { %p2626_p0 = scmp.ne.s32.totalorder %s3397_s25, %s2625_s22  ;;  %p2634_p9 = scmp.lt.s32.totalorder %s2625_s22, %s2625_s22 }
  0x59   : > { %p2628_p2 = pnand %p2626_p0, %p3409_p8  ;;  %p2635_p4 = por %p2634_p9, %p2633_p7 }
  0x5b   : > { %p2629_p5 = pneg %p2628_p2 }
  0x5d   : > { %p2636_p10 = pnand %p2635_p4, %p2629_p5 }
  0x5f   : > { %2639 = shalt.err (!%p2636_p10)
}
  0x60   : > { %2406 = dma.hbm_to_vmem [thread:$0]  (!%p3393_p6), %s4147_s5, 256, %s3397_s25, [#allocation12], %s3229_s23, %s3229_s23, %s3230_s16  }
  0x61   : > { %s4148_s7 = sld [smem:[#allocation53_spill]] }
  0x67   : > { %s2640_s19 = scalar_lea.hbm %s4148_s7, 256 }
  0x68   : > { %p2641_p11 = scmp.ne.s32.totalorder %s4148_s7, %s2640_s19  ;;  %p2647_p0 = scmp.lt.u32.totalorder %s2640_s19, %s4148_s7 }
  0x6a   : > { %p2643_p12 = pnand %p2641_p11, %p3409_p8 }
  0x6c   : > { %p2644_p13 = pneg %p2643_p12 }
  0x6e   : > { %p2649_p2 = pnand %p2647_p0, %p2644_p13 }
  0x70   : > { %2652 = shalt.err (!%p2649_p2)
}
  0x71   : > { %s2653_s25 = scalar_lea.vmem %s3399_s27, 256  ;;  %p2661_p4 = scmp.lt.s32.totalorder %s3399_s27, %s3399_s27 }
  0x72   : > { %p2654_p5 = scmp.ne.s32.totalorder %s3399_s27, %s2653_s25  ;;  %p2662_p10 = scmp.lt.s32.totalorder %s2653_s25, %s2653_s25 }
  0x74   : > { %p2656_p7 = pnand %p2654_p5, %p3409_p8  ;;  %p2663_p11 = por %p2662_p10, %p2661_p4 }
  0x76   : > { %p2657_p9 = pneg %p2656_p7 }
  0x78   : > { %p2664_p12 = pnand %p2663_p11, %p2657_p9 }
  0x7a   : > { %2667 = shalt.err (!%p2664_p12)
}
  0x7b   : > { %2412 = dma.hbm_to_vmem [thread:$0]  (!%p3393_p6), %s4148_s7, 256, %s3399_s27, [#allocation15], %s3229_s23, %s3229_s23, %s3230_s16  }
  0x7c   : > { %s3231_s10 = smov [#allocation17]   ;;  %s3232_s14 = smov [#allocation20]  }
  0x7d   : > { %s575_s12 = sshll.u32 %s3231_s10, 4  ;;  %s600_s19 = sshll.u32 %s3232_s14, 4  ;;  %s576_s12 = int_to_ptr.vmem [resolvable:$true] %s575_s12  ;;  %s601_s19 = int_to_ptr.vmem [resolvable:$true] %s600_s19 }
  0x7e   : > { %s4149_s9 = sld [smem:[#allocation55_spill]] }
  0x84   : > { %s2668_s26 = scalar_lea.hbm %s4149_s9, 256 }
  0x85   : > { %p2669_p13 = scmp.ne.s32.totalorder %s4149_s9, %s2668_s26  ;;  %p2675_p5 = scmp.lt.u32.totalorder %s2668_s26, %s4149_s9 }
  0x87   : > { %p2671_p0 = pnand %p2669_p13, %p3409_p8 }
  0x89   : > { %p2672_p2 = pneg %p2671_p0 }
  0x8b   : > { %p2677_p7 = pnand %p2675_p5, %p2672_p2 }
  0x8d   : > { %2680 = shalt.err (!%p2677_p7)
}
  0x8e   : > { %s2681_s27 = scalar_lea.vmem %s576_s12, 256  ;;  %p2689_p11 = scmp.lt.s32.totalorder %s576_s12, %s576_s12 }
  0x8f   : > { %p2682_p9 = scmp.ne.s32.totalorder %s576_s12, %s2681_s27  ;;  %p2690_p12 = scmp.lt.s32.totalorder %s2681_s27, %s2681_s27 }
  0x91   : > { %p2684_p4 = pnand %p2682_p9, %p3409_p8  ;;  %p2691_p1 = por %p2690_p12, %p2689_p11 }
  0x93   : > { %p2685_p10 = pneg %p2684_p4 }
  0x95   : > { %p2692_p3 = pnand %p2691_p1, %p2685_p10 }
  0x97   : > { %2695 = shalt.err (!%p2692_p3)
}
  0x98   : > { %2418 = dma.hbm_to_vmem [thread:$0]  (!%p3393_p6), %s4149_s9, 256, %s576_s12, [#allocation18], %s3229_s23, %s3229_s23, %s3230_s16  }
  0x99   : > { %s4150_s11 = sld [smem:[#allocation57_spill]] }
  0x9f   : > { %s2696_s28 = scalar_lea.hbm %s4150_s11, 16 }
  0xa0   : > { %p2697_p1 = scmp.ne.s32.totalorder %s4150_s11, %s2696_s28  ;;  %p2703_p0 = scmp.lt.u32.totalorder %s2696_s28, %s4150_s11 }
  0xa2   : > { %p2699_p3 = pnand %p2697_p1, %p3409_p8 }
  0xa4   : > { %p2700_p13 = pneg %p2699_p3 }
  0xa6   : > { %p2705_p2 = pnand %p2703_p0, %p2700_p13 }
  0xa8   : > { %2708 = shalt.err (!%p2705_p2)
}
  0xa9   : > { %s2709_s22 = scalar_lea.vmem %s601_s19, 16  ;;  %s2716_s12 = scalar_lea.vmem %s601_s19, 32 }
  0xaa   : > { %p2710_p5 = scmp.ne.s32.totalorder %s601_s19, %s2709_s22  ;;  %p2717_p4 = scmp.lt.s32.totalorder %s601_s19, %s601_s19 }
  0xab   : > { %p2718_p10 = scmp.lt.s32.totalorder %s2716_s12, %s2709_s22 }
  0xac   : > { %p2712_p7 = pnand %p2710_p5, %p3409_p8 }
  0xad   : > { %p2719_p11 = por %p2718_p10, %p2717_p4 }
  0xae   : > { %p2713_p9 = pneg %p2712_p7 }
  0xb0   : > { %p2720_p12 = pnand %p2719_p11, %p2713_p9 }
  0xb2   : > { %2723 = shalt.err (!%p2720_p12)
}
  0xb3   : > { %2424 = dma.hbm_to_vmem [thread:$0]  (!%p3393_p6), %s4150_s11, 16, %s601_s19, [#allocation21]  }
  0xb4   : > { %s3233_s8 = smov [#allocation23]   ;;  %s3234_s14 = smov [#allocation26]  }
  0xb5   : > { %s621_s10 = sshll.u32 %s3233_s8, 4  ;;  %s645_s28 = sshll.u32 %s3234_s14, 4  ;;  %s622_s10 = int_to_ptr.vmem [resolvable:$true] %s621_s10  ;;  %s646_s28 = int_to_ptr.vmem [resolvable:$true] %s645_s28 }
  0xb6   : > { %s4151_s13 = sld [smem:[#allocation59_spill]] }
  0xbc   : > { %s2724_s18 = scalar_lea.hbm %s4151_s13, 256 }
  0xbd   : > { %p2725_p1 = scmp.ne.s32.totalorder %s4151_s13, %s2724_s18  ;;  %p2731_p0 = scmp.lt.u32.totalorder %s2724_s18, %s4151_s13 }
  0xbf   : > { %p2727_p3 = pnand %p2725_p1, %p3409_p8 }
  0xc1   : > { %p2728_p13 = pneg %p2727_p3 }
  0xc3   : > { %p2733_p2 = pnand %p2731_p0, %p2728_p13 }
  0xc5   : > { %2736 = shalt.err (!%p2733_p2)
}
  0xc6   : > { %s2737_s19 = scalar_lea.vmem %s622_s10, 256  ;;  %p2745_p4 = scmp.lt.s32.totalorder %s622_s10, %s622_s10 }
  0xc7   : > { %p2738_p5 = scmp.ne.s32.totalorder %s622_s10, %s2737_s19  ;;  %p2746_p10 = scmp.lt.s32.totalorder %s2737_s19, %s2737_s19 }
  0xc9   : > { %p2740_p7 = pnand %p2738_p5, %p3409_p8  ;;  %p2747_p11 = por %p2746_p10, %p2745_p4 }
  0xcb   : > { %p2741_p9 = pneg %p2740_p7 }
  0xcd   : > { %p2748_p12 = pnand %p2747_p11, %p2741_p9 }
  0xcf   : > { %2751 = shalt.err (!%p2748_p12)
}
  0xd0   : > { %2430 = dma.hbm_to_vmem [thread:$0]  (!%p3393_p6), %s4151_s13, 256, %s622_s10, [#allocation24], %s3229_s23, %s3229_s23, %s3230_s16  }
  0xd1   : > { %s4152_s15 = sld [smem:[#allocation61_spill]] }
  0xd7   : > { %s2752_s26 = scalar_lea.hbm %s4152_s15, 256 }
  0xd8   : > { %p2753_p1 = scmp.ne.s32.totalorder %s4152_s15, %s2752_s26  ;;  %p2759_p0 = scmp.lt.u32.totalorder %s2752_s26, %s4152_s15 }
  0xda   : > { %p2755_p3 = pnand %p2753_p1, %p3409_p8 }
  0xdc   : > { %p2756_p13 = pneg %p2755_p3 }
  0xde   : > { %p2761_p2 = pnand %p2759_p0, %p2756_p13 }
  0xe0   : > { %2764 = shalt.err (!%p2761_p2)
}
  0xe1   : > { %s2765_s27 = scalar_lea.vmem %s646_s28, 256  ;;  %p2773_p4 = scmp.lt.s32.totalorder %s646_s28, %s646_s28 }
  0xe2   : > { %p2766_p5 = scmp.ne.s32.totalorder %s646_s28, %s2765_s27  ;;  %p2774_p10 = scmp.lt.s32.totalorder %s2765_s27, %s2765_s27 }
  0xe4   : > { %p2768_p7 = pnand %p2766_p5, %p3409_p8  ;;  %p2775_p11 = por %p2774_p10, %p2773_p4 }
  0xe6   : > { %p2769_p9 = pneg %p2768_p7 }
  0xe8   : > { %p2776_p12 = pnand %p2775_p11, %p2769_p9 }
  0xea   : > { %2779 = shalt.err (!%p2776_p12)
}
  0xeb   : > { %2436 = dma.hbm_to_vmem [thread:$0]  (!%p3393_p6), %s4152_s15, 256, %s646_s28, [#allocation27], %s3229_s23, %s3229_s23, %s3230_s16  }
  0xec   : > { %s3235_s1 = smov [#allocation29]   ;;  %s4153_s17 = sld [smem:[#allocation63_spill]] }
  0xed   : > { %s670_s8 = sshll.u32 %s3235_s1, 4  ;;  %s671_s8 = int_to_ptr.vmem [resolvable:$true] %s670_s8 }
  0xf2   : > { %s2780_s26 = scalar_lea.hbm %s4153_s17, 16 }
  0xf3   : > { %p2781_p1 = scmp.ne.s32.totalorder %s4153_s17, %s2780_s26  ;;  %p2787_p0 = scmp.lt.u32.totalorder %s2780_s26, %s4153_s17 }
  0xf5   : > { %p2783_p3 = pnand %p2781_p1, %p3409_p8 }
  0xf7   : > { %p2784_p13 = pneg %p2783_p3 }
  0xf9   : > { %p2789_p2 = pnand %p2787_p0, %p2784_p13 }
  0xfb   : > { %2792 = shalt.err (!%p2789_p2)
}
  0xfc   : > { %s2793_s23 = scalar_lea.vmem %s671_s8, 16  ;;  %s2800_s16 = scalar_lea.vmem %s671_s8, 32 }
  0xfd   : > { %p2794_p5 = scmp.ne.s32.totalorder %s671_s8, %s2793_s23  ;;  %p2801_p4 = scmp.lt.s32.totalorder %s671_s8, %s671_s8 }
  0xfe   : > { %p2802_p10 = scmp.lt.s32.totalorder %s2800_s16, %s2793_s23 }
  0xff   : > { %p2796_p7 = pnand %p2794_p5, %p3409_p8 }
 0x100   : > { %p2803_p11 = por %p2802_p10, %p2801_p4 }
 0x101   : > { %p2797_p9 = pneg %p2796_p7 }
 0x103   : > { %p2804_p12 = pnand %p2803_p11, %p2797_p9 }
 0x105   : > { %2807 = shalt.err (!%p2804_p12)
}
 0x106   : > { %2442 = dma.hbm_to_vmem [thread:$0]  (!%p3393_p6), %s4153_s17, 16, %s671_s8, [#allocation30]  }
 0x107   : > { %s2109_s10 = sadd.s32 4294967294, %s3224_s21   ;;  %s3586_s19 = sadd.s32 1, %s3224_s21  }
 0x108   : > { %s50_s1 = ssub.s32 %s3224_s21, %s3586_s19  ;;  %s53_s14 = sadd.s32 1, %s3220_s20 }
 0x109   : > { %p51_p1 = scmp.eq.s32.totalorder %s50_s1, 0  ;;  %p60_p3 = scmp.ne.s32.totalorder %s3220_s20, %s3216_s30 }
 0x10a   : > { %p61_p13 = scmp.eq.s32.totalorder %s3224_s21, 0  ;;  %p66_p0 = scmp.ne.s32.totalorder %s3216_s30, %s3212_s0 }
 0x10b   : > { %s3597_s29 = scalar_select %p51_p1, %s3220_s20, %s53_s14  }
 0x10c   : > { %p62_p2 = por %p61_p13, %p60_p3  ;;  %p4155_p5 = scmp.eq.s32.totalorder %s3377_s2, 0 }
 0x10d   : > { %4154 = sst [smem:[#allocation45_spill]] %s3597_s29  ;;  %p478_p9 = scmp.eq.s32.totalorder %s3377_s2, 1 }
 0x10e   : > { %p3601_p7 = por %p4155_p5, %p66_p0  ;;  %p484_p4 = scmp.eq.s32.totalorder %s2109_s10, 1 }
 0x10f   : > { %p2476_p10 = scmp.lt.s32.totalorder %s3224_s21, 2  ;;  %s4107_s8 = sand.u32 1, %s3220_s20  }
 0x110   : > { %s4156_s26 = scalar_select %p3601_p7, 1, 0 }
 0x111   : > { %p3608_p11 = por %p478_p9, %p60_p3  ;;  %p3612_p12 = por %p484_p4, %p66_p0 }
 0x112   : > { %s3618_s22 = sshll.u32 %s4107_s8, 3  ;;  %s3621_s12 = sshll.u32 %s3224_s21, 7 }
 0x113   : > { %s4157_s18 = scalar_select %p3608_p11, 1, 0 }
 0x114   : > { %s4158_s25 = scalar_select %p3612_p12, 1, 0 }
 0x115   : > { %p3623_p1 = pnand %p2476_p10, %p62_p2  ;;  %s710_s16 = sand.u32 1, %s3224_s21  }
 0x116   : > { %s4160_s10 = sld [smem:[#allocation47_spill]]  ;;  %s714_s14 = scalar_lea.vmem [#allocation5], %s3618_s22 }
 0x117   : > { %s4159_s23 = scalar_select %p3623_p1, 1, 0 }
 0x118   : > { %s721_s8 = sshll.u32 %s714_s14, 4  ;;  %s3236_s5 = smov [#allocation10]   ;;  %s3635_s8 = int_to_ptr.vmem [resolvable:$true] %s721_s8 }
 0x119   : > { %s3637_s7 = sshll.u32 %s3236_s5, 4  ;;  %s3639_s9 = scalar_lea.sflag [#allocation6], %s710_s16  ;;  %s518_s7 = int_to_ptr.vmem [resolvable:$true] %s3637_s7 }
 0x11a   : > { %p3645_p13 = pneg %p3623_p1 }
 0x11c   : > { %s3632_s1 = scalar_lea.hbm %s4160_s10, %s3621_s12  ;;  %s2813_s13 = scalar_lea.hbm %s4160_s10, 256 }
 0x11d   : > { %s2808_s11 = scalar_lea.hbm %s3632_s1, 128  ;;  %p2814_p5 = scmp.lt.u32.totalorder %s3632_s1, %s4160_s10 }
 0x11e   : > { %p2809_p3 = scmp.ne.s32.totalorder %s3632_s1, %s2808_s11  ;;  %p2815_p9 = scmp.lt.u32.totalorder %s2813_s13, %s2808_s11 }
 0x11f   : > { %s4161_s28 = scalar_select %p3645_p13, 1, 0 }
 0x120   : > { %p2811_p0 = pnand %p3645_p13, %p2809_p3  ;;  %p2816_p4 = por %p2815_p9, %p2814_p5 }
 0x121   : > { %p2817_p10 = scmp.lt.u32.totalorder %s2808_s11, %s3632_s1 }
 0x122   : > { %p2812_p2 = pneg %p2811_p0 }
 0x123   : > { %p2818_p12 = por %p2817_p10, %p2816_p4 }
 0x125   : > { %p2819_p11 = pnand %p2818_p12, %p2812_p2 }
 0x127   : > { %2822 = shalt.err (!%p2819_p11)
}
 0x128   : > { %s2823_s16 = scalar_lea.vmem %s3635_s8, 128  ;;  %s3237_s27 = smov [#allocation5]  }
 0x129   : > { %p2824_p3 = scmp.ne.s32.totalorder %s3635_s8, %s2823_s16  ;;  %s2828_s14 = sshll.u32 %s3237_s27, 4  ;;  %s2829_s14 = int_to_ptr.vmem [resolvable:$false] %s2828_s14 }
 0x12a   : > { %s2830_s15 = scalar_lea.vmem %s2829_s14, 256  ;;  %p2831_p6 = scmp.lt.s32.totalorder %s3635_s8, %s2829_s14 }
 0x12b   : > { %p2826_p0 = pnand %p2824_p3, %p3645_p13  ;;  %p2832_p8 = scmp.lt.s32.totalorder %s2830_s15, %s2823_s16 }
 0x12d   : > { %p2827_p7 = pneg %p2826_p0  ;;  %p2833_p5 = por %p2832_p8, %p2831_p6 }
 0x12f   : > { %p2834_p9 = pnand %p2833_p5, %p2827_p7 }
 0x131   : > { %2837 = shalt.err (!%p2834_p9)
}
 0x132   : > { %2452 = dma.hbm_to_vmem [thread:$0]  (!%p3623_p1), %s3632_s1, 128, %s3635_s8, %s3639_s9  }
 0x133   : > { %s4162_s4 = sld [smem:[#allocation50_spill]]  ;;  %p4163_p6 = scmp.ne.s32.totalorder %s4146_s24, 0 }
 0x139   : > { %s2838_s5 = scalar_lea.hbm %s4162_s4, 16 }
 0x13a   : > { %p2839_p11 = scmp.ne.s32.totalorder %s4162_s4, %s2838_s5  ;;  %p2845_p12 = scmp.lt.u32.totalorder %s2838_s5, %s4162_s4 }
 0x13c   : > { %p2841_p8 = pnand %p2839_p11, %p4163_p6 }
 0x13e   : > { %p2842_p7 = pneg %p2841_p8 }
 0x140   : > { %p2847_p2 = pnand %p2845_p12, %p2842_p7 }
 0x142   : > { %2850 = shalt.err (!%p2847_p2)
}
 0x143   : > { %s2851_s15 = scalar_lea.vmem %s518_s7, 16  ;;  %s2858_s8 = scalar_lea.vmem %s518_s7, 32 }
 0x144   : > { %p2852_p4 = scmp.ne.s32.totalorder %s518_s7, %s2851_s15  ;;  %p2859_p0 = scmp.lt.s32.totalorder %s518_s7, %s518_s7 }
 0x145   : > { %p2860_p5 = scmp.lt.s32.totalorder %s2858_s8, %s2851_s15 }
 0x146   : > { %p2854_p10 = pnand %p2852_p4, %p4163_p6 }
 0x147   : > { %p2861_p9 = por %p2860_p5, %p2859_p0 }
 0x148   : > { %p2855_p3 = pneg %p2854_p10 }
 0x14a   : > { %p2862_p1 = pnand %p2861_p9, %p2855_p3 }
 0x14c   : > { %2865 = shalt.err (!%p2862_p1)
}
 0x14d   : > { %p4164_p11 = scmp.ne.s32.totalorder %s4144_s3, 0  ;;  %s3238_s11 = smov [#allocation13]  }
 0x14e   : > { %s541_s13 = sshll.u32 %s3238_s11, 4  ;;  %s3239_s5 = smov [#allocation16]   ;;  %s542_s13 = int_to_ptr.vmem [resolvable:$true] %s541_s13 }
 0x14f   : > { %2403 = dma.hbm_to_vmem [thread:$0]  (!%p4164_p11), %s4162_s4, 16, %s518_s7, [#allocation9]  }
 0x150   : > { %s565_s27 = sshll.u32 %s3239_s5, 4  ;;  %s4165_s6 = sld [smem:[#allocation52_spill]]  ;;  %s566_s27 = int_to_ptr.vmem [resolvable:$true] %s565_s27 }
 0x156   : > { %s2866_s17 = scalar_lea.hbm %s4165_s6, 16 }
 0x157   : > { %p2867_p1 = scmp.ne.s32.totalorder %s4165_s6, %s2866_s17  ;;  %p2873_p12 = scmp.lt.u32.totalorder %s2866_s17, %s4165_s6 }
 0x159   : > { %p2869_p8 = pnand %p2867_p1, %p4163_p6 }
 0x15b   : > { %p2870_p7 = pneg %p2869_p8 }
 0x15d   : > { %p2875_p2 = pnand %p2873_p12, %p2870_p7 }
 0x15f   : > { %2878 = shalt.err (!%p2875_p2)
}
 0x160   : > { %s2879_s7 = scalar_lea.vmem %s542_s13, 16  ;;  %s2886_s1 = scalar_lea.vmem %s542_s13, 32 }
 0x161   : > { %p2880_p4 = scmp.ne.s32.totalorder %s542_s13, %s2879_s7  ;;  %p2887_p0 = scmp.lt.s32.totalorder %s542_s13, %s542_s13 }
 0x162   : > { %p2888_p5 = scmp.lt.s32.totalorder %s2886_s1, %s2879_s7 }
 0x163   : > { %p2882_p10 = pnand %p2880_p4, %p4163_p6 }
 0x164   : > { %p2889_p9 = por %p2888_p5, %p2887_p0 }
 0x165   : > { %p2883_p3 = pneg %p2882_p10 }
 0x167   : > { %p2890_p13 = pnand %p2889_p9, %p2883_p3 }
 0x169   : > { %2893 = shalt.err (!%p2890_p13)
}
 0x16a   : > { %2409 = dma.hbm_to_vmem [thread:$0]  (!%p4164_p11), %s4165_s6, 16, %s542_s13, [#allocation12]  }
 0x16b   : > { %s4166_s16 = sld [smem:[#allocation54_spill]] }
 0x171   : > { %s2894_s14 = scalar_lea.hbm %s4166_s16, 16 }
 0x172   : > { %p2895_p1 = scmp.ne.s32.totalorder %s4166_s16, %s2894_s14  ;;  %p2901_p13 = scmp.lt.u32.totalorder %s2894_s14, %s4166_s16 }
 0x174   : > { %p2897_p8 = pnand %p2895_p1, %p4163_p6 }
 0x176   : > { %p2898_p7 = pneg %p2897_p8 }
 0x178   : > { %p2903_p12 = pnand %p2901_p13, %p2898_p7 }
 0x17a   : > { %2906 = shalt.err (!%p2903_p12)
}
 0x17b   : > { %s2907_s1 = scalar_lea.vmem %s566_s27, 16  ;;  %s2914_s13 = scalar_lea.vmem %s566_s27, 32 }
 0x17c   : > { %p2908_p2 = scmp.ne.s32.totalorder %s566_s27, %s2907_s1  ;;  %p2915_p3 = scmp.lt.s32.totalorder %s566_s27, %s566_s27 }
 0x17d   : > { %p2916_p0 = scmp.lt.s32.totalorder %s2914_s13, %s2907_s1 }
 0x17e   : > { %p2910_p4 = pnand %p2908_p2, %p4163_p6 }
 0x17f   : > { %p2917_p5 = por %p2916_p0, %p2915_p3 }
 0x180   : > { %p2911_p10 = pneg %p2910_p4 }
 0x182   : > { %p2918_p9 = pnand %p2917_p5, %p2911_p10 }
 0x184   : > { %2921 = shalt.err (!%p2918_p9)
}
 0x185   : > { %2415 = dma.hbm_to_vmem [thread:$0]  (!%p4164_p11), %s4166_s16, 16, %s566_s27, [#allocation15]  }
 0x186   : > { %s3240_s17 = smov [#allocation19]   ;;  %s3241_s14 = smov [#allocation22]  }
 0x187   : > { %s589_s29 = sshll.u32 %s3240_s17, 4  ;;  %s611_s15 = sshll.u32 %s3241_s14, 4  ;;  %s590_s29 = int_to_ptr.vmem [resolvable:$true] %s589_s29  ;;  %s612_s15 = int_to_ptr.vmem [resolvable:$true] %s611_s15 }
 0x188   : > { %s4167_s7 = sld [smem:[#allocation56_spill]] }
 0x18e   : > { %s2922_s4 = scalar_lea.hbm %s4167_s7, 16 }
 0x18f   : > { %p2923_p1 = scmp.ne.s32.totalorder %s4167_s7, %s2922_s4  ;;  %p2929_p13 = scmp.lt.u32.totalorder %s2922_s4, %s4167_s7 }
 0x191   : > { %p2925_p8 = pnand %p2923_p1, %p4163_p6 }
 0x193   : > { %p2926_p7 = pneg %p2925_p8 }
 0x195   : > { %p2931_p12 = pnand %p2929_p13, %p2926_p7 }
 0x197   : > { %2934 = shalt.err (!%p2931_p12)
}
 0x198   : > { %s2935_s27 = scalar_lea.vmem %s590_s29, 16  ;;  %s2942_s5 = scalar_lea.vmem %s590_s29, 32 }
 0x199   : > { %p2936_p2 = scmp.ne.s32.totalorder %s590_s29, %s2935_s27  ;;  %p2943_p3 = scmp.lt.s32.totalorder %s590_s29, %s590_s29 }
 0x19a   : > { %p2944_p0 = scmp.lt.s32.totalorder %s2942_s5, %s2935_s27 }
 0x19b   : > { %p2938_p4 = pnand %p2936_p2, %p4163_p6 }
 0x19c   : > { %p2945_p5 = por %p2944_p0, %p2943_p3 }
 0x19d   : > { %p2939_p10 = pneg %p2938_p4 }
 0x19f   : > { %p2946_p9 = pnand %p2945_p5, %p2939_p10 }
 0x1a1   : > { %2949 = shalt.err (!%p2946_p9)
}
 0x1a2   : > { %2421 = dma.hbm_to_vmem [thread:$0]  (!%p4164_p11), %s4167_s7, 16, %s590_s29, [#allocation18]  }
 0x1a3   : > { %s4168_s8 = sld [smem:[#allocation58_spill]] }
 0x1a9   : > { %s2950_s10 = scalar_lea.hbm %s4168_s8, 16 }
 0x1aa   : > { %p2951_p1 = scmp.ne.s32.totalorder %s4168_s8, %s2950_s10  ;;  %p2957_p13 = scmp.lt.u32.totalorder %s2950_s10, %s4168_s8 }
 0x1ac   : > { %p2953_p8 = pnand %p2951_p1, %p4163_p6 }
 0x1ae   : > { %p2954_p7 = pneg %p2953_p8 }
 0x1b0   : > { %p2959_p12 = pnand %p2957_p13, %p2954_p7 }
 0x1b2   : > { %2962 = shalt.err (!%p2959_p12)
}
 0x1b3   : > { %s2963_s5 = scalar_lea.vmem %s612_s15, 16  ;;  %s2970_s29 = scalar_lea.vmem %s612_s15, 32 }
 0x1b4   : > { %p2964_p2 = scmp.ne.s32.totalorder %s612_s15, %s2963_s5  ;;  %p2971_p3 = scmp.lt.s32.totalorder %s612_s15, %s612_s15 }
 0x1b5   : > { %p2972_p0 = scmp.lt.s32.totalorder %s2970_s29, %s2963_s5 }
 0x1b6   : > { %p2966_p4 = pnand %p2964_p2, %p4163_p6 }
 0x1b7   : > { %p2973_p5 = por %p2972_p0, %p2971_p3 }
 0x1b8   : > { %p2967_p10 = pneg %p2966_p4 }
 0x1ba   : > { %p2974_p9 = pnand %p2973_p5, %p2967_p10 }
 0x1bc   : > { %2977 = shalt.err (!%p2974_p9)
}
 0x1bd   : > { %2427 = dma.hbm_to_vmem [thread:$0]  (!%p4164_p11), %s4168_s8, 16, %s612_s15, [#allocation21]  }
 0x1be   : > { %s3242_s4 = smov [#allocation25]   ;;  %s3243_s10 = smov [#allocation28]  }
 0x1bf   : > { %s635_s6 = sshll.u32 %s3242_s4, 4  ;;  %s659_s1 = sshll.u32 %s3243_s10, 4  ;;  %s636_s6 = int_to_ptr.vmem [resolvable:$true] %s635_s6  ;;  %s660_s1 = int_to_ptr.vmem [resolvable:$true] %s659_s1 }
 0x1c0   : > { %s4169_s27 = sld [smem:[#allocation60_spill]] }
 0x1c6   : > { %s2978_s7 = scalar_lea.hbm %s4169_s27, 16 }
 0x1c7   : > { %p2979_p1 = scmp.ne.s32.totalorder %s4169_s27, %s2978_s7  ;;  %p2985_p13 = scmp.lt.u32.totalorder %s2978_s7, %s4169_s27 }
 0x1c9   : > { %p2981_p8 = pnand %p2979_p1, %p4163_p6 }
 0x1cb   : > { %p2982_p7 = pneg %p2981_p8 }
 0x1cd   : > { %p2987_p12 = pnand %p2985_p13, %p2982_p7 }
 0x1cf   : > { %2990 = shalt.err (!%p2987_p12)
}
 0x1d0   : > { %s2991_s15 = scalar_lea.vmem %s636_s6, 16  ;;  %s2998_s14 = scalar_lea.vmem %s636_s6, 32 }
 0x1d1   : > { %p2992_p2 = scmp.ne.s32.totalorder %s636_s6, %s2991_s15  ;;  %p2999_p3 = scmp.lt.s32.totalorder %s636_s6, %s636_s6 }
 0x1d2   : > { %p3000_p0 = scmp.lt.s32.totalorder %s2998_s14, %s2991_s15 }
 0x1d3   : > { %p2994_p4 = pnand %p2992_p2, %p4163_p6 }
 0x1d4   : > { %p3001_p5 = por %p3000_p0, %p2999_p3 }
 0x1d5   : > { %p2995_p10 = pneg %p2994_p4 }
 0x1d7   : > { %p3002_p9 = pnand %p3001_p5, %p2995_p10 }
 0x1d9   : > { %3005 = shalt.err (!%p3002_p9)
}
 0x1da   : > { %2433 = dma.hbm_to_vmem [thread:$0]  (!%p4164_p11), %s4169_s27, 16, %s636_s6, [#allocation24]  }
 0x1db   : > { %s4170_s13 = sld [smem:[#allocation62_spill]] }
 0x1e1   : > { %s3006_s11 = scalar_lea.hbm %s4170_s13, 16 }
 0x1e2   : > { %p3007_p1 = scmp.ne.s32.totalorder %s4170_s13, %s3006_s11  ;;  %p3013_p13 = scmp.lt.u32.totalorder %s3006_s11, %s4170_s13 }
 0x1e4   : > { %p3009_p8 = pnand %p3007_p1, %p4163_p6 }
 0x1e6   : > { %p3010_p7 = pneg %p3009_p8 }
 0x1e8   : > { %p3015_p12 = pnand %p3013_p13, %p3010_p7 }
 0x1ea   : > { %3018 = shalt.err (!%p3015_p12)
}
 0x1eb   : > { %s3019_s14 = scalar_lea.vmem %s660_s1, 16  ;;  %s3026_s6 = scalar_lea.vmem %s660_s1, 32 }
 0x1ec   : > { %p3020_p2 = scmp.ne.s32.totalorder %s660_s1, %s3019_s14  ;;  %p3027_p3 = scmp.lt.s32.totalorder %s660_s1, %s660_s1 }
 0x1ed   : > { %p3028_p0 = scmp.lt.s32.totalorder %s3026_s6, %s3019_s14 }
 0x1ee   : > { %p3022_p4 = pnand %p3020_p2, %p4163_p6 }
 0x1ef   : > { %p3029_p5 = por %p3028_p0, %p3027_p3 }
 0x1f0   : > { %p3023_p10 = pneg %p3022_p4 }
 0x1f2   : > { %p3030_p9 = pnand %p3029_p5, %p3023_p10 }
 0x1f4   : > { %3033 = shalt.err (!%p3030_p9)
}
 0x1f5   : > { %2439 = dma.hbm_to_vmem [thread:$0]  (!%p4164_p11), %s4170_s13, 16, %s660_s1, [#allocation27]  }
 0x1f6   : > { %s3244_s16 = smov [#allocation31]   ;;  %s4171_s29 = sld [smem:[#allocation64_spill]] }
 0x1f7   : > { %s681_s7 = sshll.u32 %s3244_s16, 4  ;;  %s682_s7 = int_to_ptr.vmem [resolvable:$true] %s681_s7 }
 0x1fc   : > { %s3034_s17 = scalar_lea.hbm %s4171_s29, 16 }
 0x1fd   : > { %p3035_p1 = scmp.ne.s32.totalorder %s4171_s29, %s3034_s17  ;;  %p3041_p13 = scmp.lt.u32.totalorder %s3034_s17, %s4171_s29 }
 0x1ff   : > { %p3037_p8 = pnand %p3035_p1, %p4163_p6 }
 0x201   : > { %p3038_p7 = pneg %p3037_p8 }
 0x203   : > { %p3043_p12 = pnand %p3041_p13, %p3038_p7 }
 0x205   : > { %3046 = shalt.err (!%p3043_p12)
}
 0x206   : > { %s3047_s1 = scalar_lea.vmem %s682_s7, 16  ;;  %s3054_s4 = scalar_lea.vmem %s682_s7, 32 }
 0x207   : > { %p3048_p2 = scmp.ne.s32.totalorder %s682_s7, %s3047_s1  ;;  %p3055_p3 = scmp.lt.s32.totalorder %s682_s7, %s682_s7 }
 0x208   : > { %p3056_p0 = scmp.lt.s32.totalorder %s3054_s4, %s3047_s1 }
 0x209   : > { %p3050_p4 = pnand %p3048_p2, %p4163_p6 }
 0x20a   : > { %p3057_p5 = por %p3056_p0, %p3055_p3 }
 0x20b   : > { %p3051_p10 = pneg %p3050_p4 }
 0x20d   : > { %p3058_p9 = pnand %p3057_p5, %p3051_p10 }
 0x20f   : > { %3061 = shalt.err (!%p3058_p9)
}
 0x210   : > { %2445 = dma.hbm_to_vmem [thread:$0]  (!%p4164_p11), %s4171_s29, 16, %s682_s7, [#allocation30]  }
 0x211   : > { %s4172_s11 = sld [smem:[#allocation46_spill]]  ;;  %s696_s17 = scalar_lea.vmem [#allocation2], %s3618_s22 }
 0x212   : > { %s703_s15 = sshll.u32 %s696_s17, 4  ;;  %s4173_s3 = sand.u32 1, %s3220_s20   ;;  %s704_s15 = int_to_ptr.vmem [resolvable:$true] %s703_s15 }
 0x213   : > { %s693_s14 = scalar_lea.sflag [#allocation3], %s4173_s3  ;;  %p4174_p1 = scmp.ne.s32.totalorder %s4161_s28, 0 }
 0x217   : > { %s3818_s5 = scalar_lea.hbm %s4172_s11, %s3621_s12  ;;  %s3067_s4 = scalar_lea.hbm %s4172_s11, 256 }
 0x218   : > { %s3062_s6 = scalar_lea.hbm %s3818_s5, 128  ;;  %p3068_p11 = scmp.lt.u32.totalorder %s3818_s5, %s4172_s11 }
 0x219   : > { %p3063_p6 = scmp.ne.s32.totalorder %s3818_s5, %s3062_s6  ;;  %p3069_p13 = scmp.lt.u32.totalorder %s3067_s4, %s3062_s6 }
 0x21a   : > { %p3071_p2 = scmp.lt.u32.totalorder %s3062_s6, %s3818_s5 }
 0x21b   : > { %p3065_p8 = pnand %p3063_p6, %p4174_p1  ;;  %p3070_p12 = por %p3069_p13, %p3068_p11 }
 0x21d   : > { %p3066_p7 = pneg %p3065_p8  ;;  %p3072_p4 = por %p3071_p2, %p3070_p12 }
 0x21f   : > { %p3073_p10 = pnand %p3072_p4, %p3066_p7 }
 0x221   : > { %3076 = shalt.err (!%p3073_p10)
}
 0x222   : > { %s3077_s16 = scalar_lea.vmem %s704_s15, 128  ;;  %s3245_s24 = smov [#allocation2]  }
 0x223   : > { %p3078_p3 = scmp.ne.s32.totalorder %s704_s15, %s3077_s16  ;;  %s3082_s17 = sshll.u32 %s3245_s24, 4  ;;  %s3083_s17 = int_to_ptr.vmem [resolvable:$false] %s3082_s17 }
 0x224   : > { %s3084_s3 = scalar_lea.vmem %s3083_s17, 256  ;;  %p3085_p9 = scmp.lt.s32.totalorder %s704_s15, %s3083_s17 }
 0x225   : > { %p3080_p0 = pnand %p3078_p3, %p4174_p1  ;;  %p3086_p6 = scmp.lt.s32.totalorder %s3084_s3, %s3077_s16 }
 0x227   : > { %p3081_p5 = pneg %p3080_p0  ;;  %p3087_p8 = por %p3086_p6, %p3085_p9 }
 0x229   : > { %p3088_p11 = pnand %p3087_p8, %p3081_p5 }
 0x22b   : > { %3091 = shalt.err (!%p3088_p11)
}
 0x22c   : > { %p4175_p13 = scmp.ne.s32.totalorder %s4159_s23, 0  ;;  %s4176_s1 = sld [smem:[#allocation48_spill]] }
 0x22d   : > { %s732_s8 = scalar_lea.vmem [#allocation7], %s3618_s22 }
 0x22e   : > { %2449 = dma.hbm_to_vmem [thread:$0]  (!%p4175_p13), %s3818_s5, 128, %s704_s15, %s693_s14  }
 0x22f   : > { %s739_s10 = sshll.u32 %s732_s8, 4  ;;  %s740_s10 = int_to_ptr.vmem [resolvable:$true] %s739_s10 }
 0x232   : > { %s3844_s4 = scalar_lea.hbm %s4176_s1, %s3621_s12  ;;  %s3097_s5 = scalar_lea.hbm %s4176_s1, 256 }
 0x233   : > { %s3092_s16 = scalar_lea.hbm %s3844_s4, 128  ;;  %p3098_p4 = scmp.lt.u32.totalorder %s3844_s4, %s4176_s1 }
 0x234   : > { %p3093_p7 = scmp.ne.s32.totalorder %s3844_s4, %s3092_s16  ;;  %p3099_p10 = scmp.lt.u32.totalorder %s3097_s5, %s3092_s16 }
 0x235   : > { %p3101_p0 = scmp.lt.u32.totalorder %s3092_s16, %s3844_s4 }
 0x236   : > { %p3095_p12 = pnand %p3093_p7, %p4174_p1  ;;  %p3100_p3 = por %p3099_p10, %p3098_p4 }
 0x238   : > { %p3096_p2 = pneg %p3095_p12  ;;  %p3102_p5 = por %p3101_p0, %p3100_p3 }
 0x23a   : > { %p3103_p9 = pnand %p3102_p5, %p3096_p2 }
 0x23c   : > { %3106 = shalt.err (!%p3103_p9)
}
 0x23d   : > { %s3107_s22 = scalar_lea.vmem %s740_s10, 128  ;;  %s3246_s12 = smov [#allocation7]  }
 0x23e   : > { %p3108_p6 = scmp.ne.s32.totalorder %s740_s10, %s3107_s22  ;;  %s3112_s3 = sshll.u32 %s3246_s12, 4  ;;  %s3113_s3 = int_to_ptr.vmem [resolvable:$false] %s3112_s3 }
 0x23f   : > { %s3114_s6 = scalar_lea.vmem %s3113_s3, 256  ;;  %p3115_p7 = scmp.lt.s32.totalorder %s740_s10, %s3113_s3 }
 0x240   : > { %p3110_p8 = pnand %p3108_p6, %p4174_p1  ;;  %p3116_p12 = scmp.lt.s32.totalorder %s3114_s6, %s3107_s22 }
 0x242   : > { %p3111_p11 = pneg %p3110_p8  ;;  %p3117_p13 = por %p3116_p12, %p3115_p7 }
 0x244   : > { %p3118_p4 = pnand %p3117_p13, %p3111_p11 }
 0x246   : > { %3121 = shalt.err (!%p3118_p4)
}
 0x247   : > { %p4177_p10 = scmp.ne.s32.totalorder %s4159_s23, 0  ;;  %s4178_s7 = sld [smem:[#allocation44_spill]] }
 0x249   : > { %2455 = dma.hbm_to_vmem [thread:$0]  (!%p4177_p10), %s3844_s4, 128, %s740_s10, %s3639_s9  }
 0x24d   : > { %p4179_p2 = scmp.ne.s32.totalorder %s4178_s7, 0 }
 0x24e   : > { %s3868_s28 = sand.u32 (!%p4179_p2), 1, %s3216_s30   ;;  %p4180_p1 = scmp.ne.s32.totalorder (!%p4179_p2), %s4156_s26, 0 }
 0x24f   : > { %748 = sbr.rel (%p4179_p2) target bundleno = 3143 (0xc47), region = 96  ;;  %s3871_s8 = sshll.u32 (!%p4179_p2), %s3868_s28, 3 }
 0x250   : > { %s751_s16 = scalar_lea.sflag (!%p4179_p2), [#allocation3], %s3868_s28  ;;  %s754_s24 = scalar_lea.vmem (!%p4179_p2), [#allocation2], %s3871_s8 }
 0x256   : > { %3167 = dma.done.wait (%p4180_p1), %s751_s16, 128  }
 0x257   : > { %3169 = vsyncadd (%p4180_p1), %s751_s16, 4294967168  ;;  %s759_s9 = sand.u32 1, %s3377_s2   ;;  %s763_s4 = scalar_lea.vmem [#allocation5], %s3871_s8 }
 0x258   : > { %s760_s23 = scalar_lea.sflag [#allocation6], %s759_s9 }
 0x259   : > { %3171 = dma.done.wait (%p4180_p1), %s760_s23, 256  }
 0x25a   : > { %3173 = vsyncadd (%p4180_p1), %s760_s23, 4294967040  ;;  %s772_s10 = scalar_lea.vmem [#allocation7], %s3871_s8  ;;  %p4181_p13 = scmp.eq.s32.totalorder %s3377_s2, 0 }
 0x25c   : > { %3175 = dma.done.wait (%p4181_p13), [#allocation9], 272   ;;  %p4182_p3 = pmov %p4181_p13 }
 0x25e   : > { %3177 = vsyncadd (%p4182_p3), [#allocation9], 4294967024  ;;  %p4183_p0 = pmov %p4182_p3 }
 0x260   : > { %3179 = dma.done.wait (%p4183_p0), [#allocation12], 272   ;;  %p4184_p5 = pmov %p4183_p0 }
 0x261   : > { %p4185_p9 = pmov %p4183_p0 }
 0x262   : > { %3181 = vsyncadd (%p4184_p5), [#allocation12], 4294967024 }
 0x263   : > { %3183 = dma.done.wait (%p4185_p9), [#allocation15], 272   ;;  %p4186_p6 = pmov %p4183_p0 }
 0x264   : > { %p4187_p8 = pmov %p4183_p0 }
 0x265   : > { %3185 = vsyncadd (%p4186_p6), [#allocation15], 4294967024 }
 0x266   : > { %3187 = dma.done.wait (%p4187_p8), [#allocation18], 272   ;;  %p4188_p11 = pmov %p4183_p0 }
 0x267   : > { %p4189_p7 = pmov %p4183_p0 }
 0x268   : > { %3189 = vsyncadd (%p4188_p11), [#allocation18], 4294967024 }
 0x269   : > { %3191 = dma.done.wait (%p4189_p7), [#allocation21], 32   ;;  %p4190_p12 = pmov %p4183_p0 }
 0x26a   : > { %p4191_p4 = pmov %p4183_p0 }
 0x26b   : > { %3193 = vsyncadd (%p4190_p12), [#allocation21], 4294967264 }
 0x26c   : > { %3195 = dma.done.wait (%p4191_p4), [#allocation24], 272   ;;  %p4192_p10 = pmov %p4183_p0 }
 0x26d   : > { %p4193_p2 = pmov %p4183_p0 }
 0x26e   : > { %3197 = vsyncadd (%p4192_p10), [#allocation24], 4294967024 }
 0x26f   : > { %3199 = dma.done.wait (%p4193_p2), [#allocation27], 272   ;;  %p4194_p1 = pmov %p4183_p0 }
 0x270   : > { %p4195_p13 = pmov %p4183_p0 }
 0x271   : > { %3201 = vsyncadd (%p4194_p1), [#allocation27], 4294967024 }
 0x272   : > { %3203 = dma.done.wait (%p4195_p13), [#allocation30], 32   ;;  %p4196_p3 = pmov %p4183_p0 }
 0x273   : > { %v3247_v0 = vmov 0.0   ;;  %vm3248_vm0 = vmmov 0   ;;  %v2552_v1 = vld [vmem:[#allocation11] sm:$0xff]   ;;  %v2553_v2 = vld [vmem:[#allocation8] sm:$0xff]   ;;  %vm931_vm1 = vcmask 261120   ;;  %v2555_v5 = vld [vmem:[#allocation8 + $0x8] sm:$0xff]  }
 0x274   : > { %3205 = vsyncadd (%p4196_p3), [#allocation30], 4294967264  ;;  %2237 = vmatprep.subr.bf16.mxu1 %v3247_v0  ;;  %2229 = vmatprep.subr.bf16.mxu0 %v3247_v0  ;;  %v2554_v3 = vld [vmem:[#allocation11 + $0x8] sm:$0xff]   ;;  %v2159_v9 = vld [vmem:[#allocation13] ss:$0 sm:$0xff]  ;;  %vm1110_vm2 = vcmask 64512  }
 0x275   : > { %2241 = vmatprep.mubr.msk.bf16.mxu1 %vm3248_vm0, %v3247_v0  ;;  %2233 = vmatprep.mubr.msk.bf16.mxu0 %vm3248_vm0, %v3247_v0  ;;  %v3927_v4 = vld [vmem:[%s754_s24] sm:$0xff]  ;;  %v904_v6 = vld [vmem:[%s763_s4] sm:$0xff]  ;;  %s3249_s26 = smov 112   ;;  %s3250_s17 = smov 120   ;;  %vm1172_vm3 = vcmask 1043456   ;;  %vm1562_vm4 = vcmask 130048  }
 0x276   : > { %2238 = vmatpush3.bf16.msra.mxu1 %v2552_v1  ;;  %2230 = vmatpush3.bf16.msra.mxu0 %v2553_v2  ;;  %v903_v7 = vpack.c.bf16 %v3927_v4, %v3927_v4  ;;  %v905_v8 = vpack.c.bf16 %v904_v6, %v904_v6  ;;  %v2155_v10 = vld [vmem:[#allocation10] ss:$0 sm:$0xff]  ;;  %s3251_s5 = smov 104   ;;  %v2556_v24 = vld [vmem:[#allocation14] sm:$0xff]   ;;  %v2163_v42 = vld [vmem:[#allocation16] ss:$0 sm:$0xff] }
 0x277   : > { %2239 = vmatprep.subr.bf16.mxu1 %v3247_v0  ;;  %2231 = vmatprep.subr.bf16.mxu0 %v3247_v0  ;;  %v2557_v25 = vld [vmem:[#allocation14 + $0x8] sm:$0xff]   ;;  %s3252_s15 = smov 8   ;;  %s3253_s14 = smov 16   ;;  %vm1564_vm5 = vcmask 195584  }
 0x278   : > { %v906_v26 = vld [vmem:[%s772_s10] sm:$0xff]  ;;  %s3254_s22 = smov 24   ;;  %s2192_s12 = sshll.u32 %s3377_s2, 7 }
 0x279   : > { %v907_v27 = vpack.c.bf16 %v906_v26, %v906_v26  ;;  %s900_s3 = scalar_lea.vmem [#allocation32], %s3871_s8  ;;  %s4197_s24 = sld [smem:[#allocation65_spill]] }
 0x27a   : > { %2240 = vmatpush3.bf16.msra.mxu1 %v2554_v3  ;;  %2232 = vmatpush3.bf16.msra.mxu0 %v2555_v5  ;;  %s1844_s6 = sshll.u32 %s900_s3, 4  ;;  %s1831_s23 = scalar_lea.sflag [#allocation4], %s3868_s28  ;;  %s4029_s6 = int_to_ptr.vmem [resolvable:$true] %s1844_s6 }
 0x27b   : > { %2253 = vmatprep.subr.bf16.mxu1 %v3247_v0  ;;  %2245 = vmatprep.subr.bf16.mxu0 %v3247_v0  ;;  %s3122_s4 = scalar_lea.vmem %s4029_s6, 128  ;;  %p4198_p5 = scmp.ne.s32.totalorder %s4157_s18, 0 }
 0x27c   : > { %p3123_p0 = scmp.ne.s32.totalorder %s4029_s6, %s3122_s4  ;;  %s3255_s2 = smov [#allocation32]  }
 0x27d   : > { %2242 = vmatmul.mubr.msk.bf16.vlgmr.msra.gmra.mrb[0].mxu1 %vm931_vm1, %v903_v7  ;;  %2234 = vmatmul.mubr.msk.bf16.vlgmr.msra.gmra.mrb[0].mxu0 %vm931_vm1, %v905_v8  ;;  %s3126_s8 = sshll.u32 %s3255_s2, 4  ;;  %s3127_s8 = int_to_ptr.vmem [resolvable:$false] %s3126_s8 }
 0x27e   : > { %2255 = vmatprep.mubr.msk.bf16.mxu1 %vm3248_vm0, %v3247_v0  ;;  %2249 = vmatprep.mubr.msk.bf16.mxu0 %vm3248_vm0, %v3247_v0  ;;  %p3124_p9 = pnand %p3123_p0, %p4198_p5  ;;  %s3128_s10 = scalar_lea.vmem %s3127_s8, 256 }
 0x27f   : > { %2246 = vmatpush3.bf16.msra.mxu0 %v2556_v24  ;;  %s4027_s9 = scalar_lea.hbm %s4197_s24, %s2192_s12  ;;  %p3129_p8 = scmp.lt.s32.totalorder %s4029_s6, %s3127_s8 }
 0x280   : > { %2247 = vmatprep.subr.bf16.mxu0 %v3247_v0  ;;  %p3125_p6 = pneg %p3124_p9  ;;  %p3130_p11 = scmp.lt.s32.totalorder %s3128_s10, %s3122_s4 }
 0x282   : > { %p3131_p7 = por %p3130_p11, %p3129_p8 }
 0x283   : > { %2248 = vmatpush3.bf16.msra.mxu0 %v2557_v25 }
 0x284   : > { %2259 = vmatprep.subr.bf16.mxu0 %v3247_v0  ;;  %p3132_p12 = pnand %p3131_p7, %p3125_p6 }
 0x286   : > { %2250 = vmatmul.mubr.msk.bf16.vlgmr.msra.gmra.mrb[4].mxu0 %vm931_vm1, %v907_v27 }
 0x287   : > { %2261 = vmatprep.mubr.msk.bf16.mxu0 %vm3248_vm0, %v3247_v0 }
 0x350   : > { %v1035_v11 = vpop.f32.mrb[0].mxu1  ;;  %v969_v14 = vpop.f32.mrb[0].mxu0 }
 0x351   : > { %v1036_v12 = vadd.f32 %v2159_v9, %v1035_v11  ;;  %v2243_v13 = vpop.f32.mrb[1].mxu1  ;;  %v970_v16 = vadd.f32 %v2155_v10, %v969_v14  ;;  %v2235_v17 = vpop.f32.mrb[1].mxu0 }
 0x352   : > { %v1038_v15 = vpop.f32.mrb[2].mxu1  ;;  %v972_v20 = vpop.f32.mrb[2].mxu0 }
 0x353   : > { %v1108_v18 = vpack.c.bf16 %v1036_v12, %v1036_v12  ;;  %v2244_v19 = vpop.f32.mrb[3].mxu1  ;;  %v2236_v21 = vpop.f32.mrb[3].mxu0  ;;  %v1107_v22 = vpack.c.bf16 %v970_v16, %v970_v16 }
 0x355   : > { %1331 = vrot.lane.b32.xlu1 %v1108_v18, %s3249_s26  ;;  %1220 = vrot.lane.b32.xlu0 %v1108_v18, %s3250_s17  ;;  %v1115_v23 = vsel %vm1110_vm2, %v1108_v18, 0 }
 0x356   : > { %2254 = vmatpush3.bf16.xpose.msra.mxu1 %v1115_v23 }
 0x357   : > { %2265 = vmatprep.subr.bf16.mxu1 %v3247_v0 }
 0x359   : > { %1329 = vrot.lane.b32.xlu1 %v1107_v22, %s3249_s26  ;;  %1217 = vrot.lane.b32.xlu0 %v1107_v22, %s3250_s17  ;;  %v1101_v43 = vpop.f32.mrb[4].mxu0 }
 0x35a   : > { %v1102_v44 = vadd.f32 %v2163_v42, %v1101_v43  ;;  %v2251_v45 = vpop.f32.mrb[5].mxu0 }
 0x35b   : > { %v1104_v46 = vpop.f32.mrb[6].mxu0 }
 0x35c   : > { %v1109_v47 = vpack.c.bf16 %v1102_v44, %v1102_v44  ;;  %v2252_v48 = vpop.f32.mrb[7].mxu0 }
 0x35d   : > { %1439 = vrot.lane.b32.xlu1 %v1107_v22, %s3251_s5  ;;  %1441 = vrot.lane.b32.xlu0 %v1108_v18, %s3251_s5 }
 0x35e   : > { %2256 = vmatmul.mubr.msk.bf16.vlgmr.msra.gmra.mrb[4].mxu1 %vm1110_vm2, %v1107_v22  ;;  %v1174_v49 = vsel %vm1172_vm3, %v1109_v47, 0 }
 0x35f   : > { %2267 = vmatprep.mubr.msk.bf16.mxu1 %vm3248_vm0, %v3247_v0  ;;  %2260 = vmatpush3.bf16.msra.mxu0 %v1174_v49  ;;  %v2558_v49 = vld [vmem:[#allocation17] sm:$0xff]  }
 0x360   : > { %2271 = vmatprep.subr.bf16.mxu0 %v3247_v0 }
 0x3c7   : > { %v1221_v28 = vpop.permute.xlu0 %1220  ;;  %v1332_v30 = vpop.permute.xlu1 %1331 }
 0x3c8   : > { %v1226_v29 = vsel %vm1110_vm2, %v1221_v28, 0  ;;  %v1337_v32 = vsel %vm1110_vm2, %v1332_v30, 0 }
 0x3c9   : > { %2266 = vmatpush3.bf16.xpose.msra.mxu1 %v1226_v29 }
 0x3ca   : > { %2277 = vmatprep.subr.bf16.mxu1 %v3247_v0 }
 0x3cb   : > { %v1218_v31 = vpop.permute.xlu0 %1217  ;;  %v1330_v34 = vpop.permute.xlu1 %1329 }
 0x3cf   : > { %v1442_v33 = vpop.permute.xlu0 %1441  ;;  %v1440_v36 = vpop.permute.xlu1 %1439 }
 0x3d0   : > { %2268 = vmatmul.mubr.msk.bf16.vlgmr.msra.gmra.mrb[8].mxu1 %vm1110_vm2, %v1218_v31  ;;  %v1447_v35 = vsel %vm1110_vm2, %v1442_v33, 0 }
 0x3d1   : > { %2278 = vmatpush3.bf16.xpose.msra.mxu1 %v1337_v32  ;;  %2279 = vmatprep.mubr.msk.bf16.mxu1 %vm3248_vm0, %v3247_v0 }
 0x3d2   : > { %2289 = vmatprep.subr.bf16.mxu1 %v3247_v0 }
 0x3d8   : > { %2280 = vmatmul.mubr.msk.bf16.vlgmr.msra.gmra.mrb[12].mxu1 %vm1110_vm2, %v1330_v34 }
 0x3d9   : > { %2290 = vmatpush3.bf16.xpose.msra.mxu1 %v1447_v35  ;;  %2291 = vmatprep.mubr.msk.bf16.mxu1 %vm3248_vm0, %v3247_v0 }
 0x3da   : > { %2301 = vmatprep.subr.bf16.mxu1 %v3247_v0 }
 0x3e0   : > { %2292 = vmatmul.mubr.msk.bf16.vlgmr.msra.gmra.mrb[16].mxu1 %vm1110_vm2, %v1440_v36 }
 0x3e1   : > { %2305 = vmatprep.mubr.msk.bf16.mxu1 %vm3248_vm0, %v3247_v0  ;;  %2302 = vmatpush3.bf16.msra.mxu1 %v2558_v49 }
 0x3e2   : > { %2303 = vmatprep.subr.bf16.mxu1 %v3247_v0 }
 0x431   : > { %v1151_v37 = vpop.f32.mrb[4].mxu1 }
 0x432   : > { %v2257_v38 = vpop.f32.mrb[5].mxu1  ;;  %v1157_v39 = vsel %vm1110_vm2, %v1151_v37, -inf }
 0x433   : > { %1158 = vmax.xlane.f32.xlu0 %v1157_v39  ;;  %v1154_v40 = vpop.f32.mrb[6].mxu1 }
 0x434   : > { %v2258_v41 = vpop.f32.mrb[7].mxu1 }
 0x4a3   : > { %v1262_v50 = vpop.f32.mrb[8].mxu1 }
 0x4a4   : > { %v2269_v51 = vpop.f32.mrb[9].mxu1  ;;  %v1268_v52 = vsel %vm1110_vm2, %v1262_v50, -inf }
 0x4a5   : > { %1269 = vmax.xlane.f32.xlu1 %v1268_v52  ;;  %v1265_v53 = vpop.f32.mrb[10].mxu1 }
 0x4a6   : > { %v2270_v54 = vpop.f32.mrb[11].mxu1 }
 0x4a7   : > { %v2559_v54 = vld [vmem:[#allocation17 + $0x8] sm:$0xff]  }
 0x4a8   : > { %2304 = vmatpush3.bf16.msra.mxu1 %v2559_v54 }
 0x4a9   : > { %2317 = vmatprep.subr.bf16.mxu1 %v3247_v0 }
 0x4ab   : > { %v1373_v55 = vpop.f32.mrb[12].mxu1 }
 0x4ac   : > { %v2281_v56 = vpop.f32.mrb[13].mxu1  ;;  %v1379_v57 = vsel %vm1110_vm2, %v1373_v55, -inf }
 0x4ad   : > { %1380 = vmax.xlane.f32.xlu0 %v1379_v57  ;;  %v1376_v58 = vpop.f32.mrb[14].mxu1 }
 0x4ae   : > { %v2282_v59 = vpop.f32.mrb[15].mxu1 }
 0x4b3   : > { %v1483_v60 = vpop.f32.mrb[16].mxu1 }
 0x4b4   : > { %v2293_v61 = vpop.f32.mrb[17].mxu1  ;;  %v1489_v62 = vsel %vm1110_vm2, %v1483_v60, -inf }
 0x4b5   : > { %1490 = vmax.xlane.f32.xlu0 %v1489_v62  ;;  %v1486_v63 = vpop.f32.mrb[18].mxu1 }
 0x4b6   : > { %v2294_v1 = vpop.f32.mrb[19].mxu1 }
 0x4c0   : > { %v1159_v2 = vpop.xlane.xlu0 %1158 }
 0x4c1   : > { %v1160_v3 = vsub.f32 %v1151_v37, %v1159_v2 }
 0x4c3   : > { %v1161_v5 = vmul.f32 1.442695, %v1160_v3 }
 0x4c5   : > { %2564 = vpow2.f32 %v1161_v5 }
 0x4cf   : > { %v2565_v6 = vpop.eup %2564 }
 0x4d0   : > { %v1163_v7 = vsel %vm1110_vm2, %v2565_v6, 0.0 }
 0x4d1   : > { %1164 = vadd.xlane.f32.xlu1 %v1163_v7 }
 0x4e2   : > { %1281 = vrot.lane.b32.xlu1 %v1109_v47, %s3250_s17 }
 0x532   : > { %v1270_v8 = vpop.xlane.xlu1 %1269 }
 0x533   : > { %v1271_v9 = vsub.f32 %v1262_v50, %v1270_v8  ;;  %v2175_v8 = vld [vmem:[#allocation19] ss:$0 sm:$0xff] }
 0x535   : > { %v1272_v10 = vmul.f32 1.442695, %v1271_v9 }
 0x537   : > { %2566 = vpow2.f32 %v1272_v10 }
 0x53a   : > { %v1381_v11 = vpop.xlane.xlu0 %1380 }
 0x53b   : > { %v1382_v12 = vsub.f32 %v1373_v55, %v1381_v11 }
 0x53d   : > { %v1383_v13 = vmul.f32 1.442695, %v1382_v12 }
 0x53f   : > { %2568 = vpow2.f32 %v1383_v13 }
 0x541   : > { %v2567_v14 = vpop.eup %2566 }
 0x542   : > { %v1491_v15 = vpop.xlane.xlu0 %1490  ;;  %v1274_v16 = vsel %vm1110_vm2, %v2567_v14, 0.0 }
 0x543   : > { %v1492_v17 = vsub.f32 %v1483_v60, %v1491_v15  ;;  %1275 = vadd.xlane.f32.xlu0 %v1274_v16 }
 0x545   : > { %v1493_v18 = vmul.f32 1.442695, %v1492_v17 }
 0x547   : > { %2570 = vpow2.f32 %v1493_v18 }
 0x549   : > { %v2569_v19 = vpop.eup %2568 }
 0x54a   : > { %v1385_v20 = vsel %vm1110_vm2, %v2569_v19, 0.0 }
 0x54b   : > { %1386 = vadd.xlane.f32.xlu1 %v1385_v20 }
 0x551   : > { %v2571_v21 = vpop.eup %2570 }
 0x552   : > { %v1495_v22 = vsel %vm1110_vm2, %v2571_v21, 0.0 }
 0x553   : > { %1496 = vadd.xlane.f32.xlu0 %v1495_v22  ;;  %v2561_v22 = vld [vmem:[#allocation23 + $0x8] sm:$0xff]  }
 0x55c   : > { %1501 = vrot.lane.b32.xlu1 %v1109_v47, %s3251_s5 }
 0x55e   : > { %v1165_v23 = vpop.xlane.xlu1 %1164 }
 0x55f   : > { %2572 = vrcp.f32 %v1165_v23 }
 0x562   : > { %v1282_v25 = vpop.permute.xlu1 %1281 }
 0x563   : > { %v1287_v28 = vsel %vm1172_vm3, %v1282_v25, 0 }
 0x569   : > { %v2573_v24 = vpop.eup %2572  ;;  %1391 = vrot.lane.b32.xlu0 %v1109_v47, %s3249_s26 }
 0x56a   : > { %v1167_v26 = vmul.f32 %v2573_v24, %v2565_v6 }
 0x56c   : > { %v1168_v27 = vpack.c.bf16 %v1167_v26, %v1167_v26 }
 0x56e   : > { %2262 = vmatmul.mubr.msk.bf16.vlgmr.msra.gmra.mrb[8].mxu0 %vm1110_vm2, %v1168_v27  ;;  %v2179_v27 = vld [vmem:[#allocation20] ss:$0 sm:$0xff] }
 0x56f   : > { %2272 = vmatpush3.bf16.msra.mxu0 %v1287_v28  ;;  %2273 = vmatprep.mubr.msk.bf16.mxu0 %vm3248_vm0, %v3247_v0 }
 0x570   : > { %2283 = vmatprep.subr.bf16.mxu0 %v3247_v0 }
 0x5d0   : > { %v1276_v29 = vpop.xlane.xlu0 %1275 }
 0x5d1   : > { %2574 = vrcp.f32 %v1276_v29  ;;  %v2180_v29 = vld [vmem:[#allocation22] ss:$0 sm:$0xff] }
 0x5d8   : > { %v1387_v30 = vpop.xlane.xlu1 %1386 }
 0x5d9   : > { %2576 = vrcp.f32 %v1387_v30 }
 0x5db   : > { %v2575_v31 = vpop.eup %2574 }
 0x5dc   : > { %v1278_v32 = vmul.f32 %v2575_v31, %v2567_v14  ;;  %v1502_v39 = vpop.permute.xlu1 %1501 }
 0x5dd   : > { %v1507_v41 = vsel %vm1172_vm3, %v1502_v39, 0 }
 0x5de   : > { %v1279_v33 = vpack.c.bf16 %v1278_v32, %v1278_v32 }
 0x5e0   : > { %2274 = vmatmul.mubr.msk.bf16.vlgmr.msra.gmra.mrb[12].mxu0 %vm1110_vm2, %v1279_v33  ;;  %v1497_v34 = vpop.xlane.xlu0 %1496  ;;  %v2562_v33 = vld [vmem:[#allocation26] sm:$0xff]  }
 0x5e1   : > { %2578 = vrcp.f32 %v1497_v34  ;;  %2285 = vmatprep.mubr.msk.bf16.mxu0 %vm3248_vm0, %v3247_v0  ;;  %v2563_v34 = vld [vmem:[#allocation26 + $0x8] sm:$0xff]  }
 0x5e3   : > { %v2577_v35 = vpop.eup %2576 }
 0x5e4   : > { %v1389_v36 = vmul.f32 %v2577_v35, %v2569_v19  ;;  %v1392_v37 = vpop.permute.xlu0 %1391  ;;  %v2181_v35 = vld [vmem:[#allocation25] ss:$0 sm:$0xff] }
 0x5e5   : > { %v1397_v38 = vsel %vm1172_vm3, %v1392_v37, 0 }
 0x5e6   : > { %2284 = vmatpush3.bf16.msra.mxu0 %v1397_v38  ;;  %v1390_v40 = vpack.c.bf16 %v1389_v36, %v1389_v36 }
 0x5e7   : > { %2295 = vmatprep.subr.bf16.mxu0 %v3247_v0 }
 0x5e9   : > { %2286 = vmatmul.mubr.msk.bf16.vlgmr.msra.gmra.mrb[16].mxu0 %vm1110_vm2, %v1390_v40 }
 0x5ea   : > { %2296 = vmatpush3.bf16.msra.mxu0 %v1507_v41  ;;  %2297 = vmatprep.mubr.msk.bf16.mxu0 %vm3248_vm0, %v3247_v0 }
 0x5eb   : > { %v2579_v42 = vpop.eup %2578  ;;  %2309 = vmatprep.subr.bf16.mxu0 %v3247_v0 }
 0x5ec   : > { %v1499_v43 = vmul.f32 %v2579_v42, %v2571_v21  ;;  %v2560_v21 = vld [vmem:[#allocation23] sm:$0xff]  }
 0x5ee   : > { %v1500_v44 = vpack.c.bf16 %v1499_v43, %v1499_v43  ;;  %v2185_v43 = vld [vmem:[#allocation28] ss:$0 sm:$0xff] }
 0x5f1   : > { %2298 = vmatmul.mubr.msk.bf16.vlgmr.msra.gmra.mrb[20].mxu0 %vm1110_vm2, %v1500_v44 }
 0x5f2   : > { %2313 = vmatprep.mubr.msk.bf16.mxu0 %vm3248_vm0, %v3247_v0  ;;  %2310 = vmatpush3.bf16.msra.mxu0 %v2560_v21 }
 0x5f3   : > { %2311 = vmatprep.subr.bf16.mxu0 %v3247_v0 }
 0x5f6   : > { %2312 = vmatpush3.bf16.msra.mxu0 %v2561_v22 }
 0x641   : > { %v1210_v45 = vpop.f32.mrb[8].mxu0 }
 0x642   : > { %v2263_v46 = vpop.f32.mrb[9].mxu0 }
 0x643   : > { %v1213_v47 = vpop.f32.mrb[10].mxu0 }
 0x644   : > { %v2264_v48 = vpop.f32.mrb[11].mxu0 }
 0x6b3   : > { %v1323_v50 = vpop.f32.mrb[12].mxu0 }
 0x6b4   : > { %1550 = vrot.lane.b32.xlu1 %v1323_v50, %s3252_s15  ;;  %v2275_v51 = vpop.f32.mrb[13].mxu0 }
 0x6b5   : > { %v1326_v52 = vpop.f32.mrb[14].mxu0 }
 0x6b6   : > { %v2276_v53 = vpop.f32.mrb[15].mxu0 }
 0x6bc   : > { %v1433_v55 = vpop.f32.mrb[16].mxu0 }
 0x6bd   : > { %1554 = vrot.lane.b32.xlu0 %v1433_v55, %s3253_s14  ;;  %v2287_v56 = vpop.f32.mrb[17].mxu0 }
 0x6be   : > { %v1436_v57 = vpop.f32.mrb[18].mxu0 }
 0x6bf   : > { %v2288_v58 = vpop.f32.mrb[19].mxu0 }
 0x6c4   : > { %v1543_v59 = vpop.f32.mrb[20].mxu0 }
 0x6c5   : > { %1558 = vrot.lane.b32.xlu1 %v1543_v59, %s3254_s22  ;;  %v2299_v60 = vpop.f32.mrb[21].mxu0 }
 0x6c6   : > { %v1546_v61 = vpop.f32.mrb[22].mxu0  ;;  %v2190_v60 = vld [vmem:[#allocation31] ss:$0 sm:$0xff] }
 0x6c7   : > { %v2300_v62 = vpop.f32.mrb[23].mxu0 }
 0x726   : > { %v1551_v63 = vpop.permute.xlu1 %1550 }
 0x727   : > { %v1561_v2 = vsel %vm1110_vm2, %v1210_v45, %v1551_v63 }
 0x72f   : > { %v1555_v1 = vpop.permute.xlu0 %1554 }
 0x730   : > { %v1563_v3 = vsel %vm1562_vm4, %v1561_v2, %v1555_v1 }
 0x737   : > { %v1559_v5 = vpop.permute.xlu1 %1558 }
 0x738   : > { %v1565_v6 = vsel %vm1564_vm5, %v1563_v3, %v1559_v5 }
 0x739   : > { %v1566_v7 = vpack.c.bf16 %v1565_v6, %v1565_v6 }
 0x73b   : > { %2306 = vmatmul.mubr.msk.bf16.vlgmr.msra.gmra.mrb[20].mxu1 %vm931_vm1, %v1566_v7 }
 0x73c   : > { %2321 = vmatprep.mubr.msk.bf16.mxu1 %vm3248_vm0, %v3247_v0  ;;  %2318 = vmatpush3.bf16.msra.mxu1 %v2562_v33 }
 0x73d   : > { %2319 = vmatprep.subr.bf16.mxu1 %v3247_v0 }
 0x740   : > { %2320 = vmatpush3.bf16.msra.mxu1 %v2563_v34 }
 0x80e   : > { %v1627_v9 = vpop.f32.mrb[20].mxu1 }
 0x80f   : > { %v1628_v10 = vadd.f32 %v2175_v8, %v1627_v9  ;;  %v2307_v11 = vpop.f32.mrb[21].mxu1 }
 0x810   : > { %v1630_v12 = vpop.f32.mrb[22].mxu1 }
 0x811   : > { %v2308_v13 = vpop.f32.mrb[23].mxu1  ;;  %v1633_v14 = vadd.f32 %v1628_v10, %v3927_v4 }
 0x813   : > { %v1636_v15 = vsel %vm931_vm1, %v1633_v14, 0.0 }
 0x814   : > { %1637 = vadd.xlane.f32.xlu0 %v1636_v15 }
 0x8a1   : > { %v1638_v16 = vpop.xlane.xlu0 %1637 }
 0x8a2   : > { %v1640_v17 = vmul.f32 0.03125, %v1638_v16 }
 0x8a4   : > { %v1641_v18 = vsub.f32 %v1633_v14, %v1640_v17 }
 0x8a6   : > { %v1642_v19 = vmul.f32 %v1641_v18, %v1641_v18 }
 0x8a8   : > { %v1643_v20 = vsel %vm931_vm1, %v1642_v19, 0.0 }
 0x8a9   : > { %1644 = vadd.xlane.f32.xlu1 %v1643_v20 }
 0x936   : > { %v1645_v23 = vpop.xlane.xlu1 %1644 }
 0x937   : > { %v1646_v24 = vmul.f32 0.03125, %v1645_v23 }
 0x939   : > { %v1647_v25 = vadd.f32 1e-05, %v1646_v24 }
 0x93b   : > { %2580 = vrsqrt.f32 %v1647_v25 }
 0x945   : > { %v2581_v26 = vpop.eup %2580 }
 0x946   : > { %v1649_v28 = vmul.f32 %v2581_v26, %v1641_v18 }
 0x948   : > { %v1656_v30 = vmul.f32 %v2179_v27, %v1649_v28 }
 0x94a   : > { %v1663_v31 = vadd.f32 %v2180_v29, %v1656_v30 }
 0x94c   : > { %v1664_v32 = vpack.c.bf16 %v1663_v31, %v1663_v31 }
 0x94e   : > { %2314 = vmatmul.mubr.msk.bf16.vlgmr.msra.gmra.mrb[24].mxu0 %vm931_vm1, %v1664_v32 }
 0xa21   : > { %v1725_v36 = vpop.f32.mrb[24].mxu0 }
 0xa22   : > { %v1726_v37 = vadd.f32 %v2181_v35, %v1725_v36  ;;  %v2315_v38 = vpop.f32.mrb[25].mxu0 }
 0xa23   : > { %v1728_v39 = vpop.f32.mrb[26].mxu0 }
 0xa24   : > { %v1731_v40 = vmax.f32 %v1726_v37, 0.0  ;;  %v2316_v41 = vpop.f32.mrb[27].mxu0 }
 0xa26   : > { %v1732_v42 = vpack.c.bf16 %v1731_v40, %v1731_v40 }
 0xa28   : > { %2322 = vmatmul.mubr.msk.bf16.vlgmr.msra.gmra.mrb[24].mxu1 %vm931_vm1, %v1732_v42 }
 0xafb   : > { %v1793_v44 = vpop.f32.mrb[24].mxu1 }
 0xafc   : > { %v1794_v45 = vadd.f32 %v2185_v43, %v1793_v44  ;;  %v2323_v46 = vpop.f32.mrb[25].mxu1 }
 0xafd   : > { %v1796_v47 = vpop.f32.mrb[26].mxu1 }
 0xafe   : > { %v2324_v48 = vpop.f32.mrb[27].mxu1  ;;  %v1799_v0 = vadd.f32 %v1794_v45, %v3927_v4  ;;  %v2189_v4 = vld [vmem:[#allocation29] ss:$0 sm:$0xff] }
 0xb00   : > { %v1802_v49 = vsel %vm931_vm1, %v1799_v0, 0.0 }
 0xb01   : > { %1803 = vadd.xlane.f32.xlu0 %v1802_v49 }
 0xb8e   : > { %v1804_v50 = vpop.xlane.xlu0 %1803 }
 0xb8f   : > { %v1805_v51 = vmul.f32 0.03125, %v1804_v50 }
 0xb91   : > { %v1806_v52 = vsub.f32 %v1799_v0, %v1805_v51 }
 0xb93   : > { %v1807_v53 = vmul.f32 %v1806_v52, %v1806_v52 }
 0xb95   : > { %v1808_v54 = vsel %vm931_vm1, %v1807_v53, 0.0 }
 0xb96   : > { %1809 = vadd.xlane.f32.xlu0 %v1808_v54 }
 0xc23   : > { %v1810_v55 = vpop.xlane.xlu0 %1809 }
 0xc24   : > { %v1811_v56 = vmul.f32 0.03125, %v1810_v55 }
 0xc26   : > { %v1812_v57 = vadd.f32 1e-05, %v1811_v56 }
 0xc28   : > { %2582 = vrsqrt.f32 %v1812_v57 }
 0xc32   : > { %v2583_v58 = vpop.eup %2582 }
 0xc33   : > { %v1814_v59 = vmul.f32 %v2583_v58, %v1806_v52 }
 0xc35   : > { %v1821_v61 = vmul.f32 %v2189_v4, %v1814_v59 }
 0xc37   : > { %v1828_v62 = vadd.f32 %v2190_v60, %v1821_v61 }
 0xc39   : > { %1829 = vst.msk [vmem:[%s900_s3] sm:$0xff] %vm931_vm1, %v1828_v62 }
 0xc3a   : > { %3135 = shalt.err (!%p3132_p12)
}
 0xc3b   : > { %s3136_s28 = scalar_lea.hbm %s4027_s9, 128  ;;  %s3140_s5 = scalar_lea.hbm %s4197_s24, 256 }
 0xc3c   : > { %p3137_p4 = scmp.ne.s32.totalorder %s4027_s9, %s3136_s28  ;;  %p3141_p1 = scmp.lt.u32.totalorder %s4027_s9, %s4197_s24 }
 0xc3d   : > { %p3142_p13 = scmp.lt.u32.totalorder %s3140_s5, %s3136_s28  ;;  %p3144_p0 = scmp.lt.u32.totalorder %s3136_s28, %s4027_s9 }
 0xc3e   : > { %p3138_p10 = pnand %p3137_p4, %p4198_p5 }
 0xc3f   : > { %p3143_p3 = por %p3142_p13, %p3141_p1 }
 0xc40   : > { %p3139_p2 = pneg %p3138_p10 }
 0xc41   : > { %p3145_p9 = por %p3144_p0, %p3143_p3 }
 0xc43   : > { %p3146_p6 = pnand %p3145_p9, %p3139_p2 }
 0xc45   : > { %3149 = shalt.err (!%p3146_p6)
}
 0xc46   : > { %2395 = dma.vmem_to_hbm [thread:$0]  (%p4198_p5), %s4029_s6, 128, %s4027_s9, %s1831_s23  }
 0xc47 PF: > { %s1856_s22 = sand.u32 1, %s3212_s0   ;;  %p4199_p8 = scmp.ne.s32.totalorder %s4158_s25, 0 }
 0xc48   : > { %p4200_p11 = scmp.ge.s32.totalorder %s3224_s21, 2  ;;  %s1857_s12 = scalar_lea.sflag [#allocation4], %s1856_s22 }
 0xc4a   : > { %p2457_p7 = pnand %p4200_p11, %p4199_p8 }
 0xc4c   : > { %3207 = dma.done.wait (!%p2457_p7), %s1857_s12, 128  }
 0xc4d   : > { %3209 = vsyncadd (!%p2457_p7), %s1857_s12, 4294967168  ;;  %s4201_s3 = sld [smem:[#allocation45_spill]]  ;;  %p43_p12 = scmp.ge.s32.totalorder %s3586_s19, 4  }
 0xc4e   : > { %s4202_s0 = smov %s3216_s30  ;;  %s4203_s30 = smov %s3220_s20 }
 0xc4f   : > { %s4205_s21 = smov %s3586_s19  ;;  %45 = sbr.rel (!%p43_p12) target bundleno = 36 (0x24), region = 229 }
 0xc53   : > { %s4204_s20 = smov %s4201_s3 }
 0xc56   :  { %1862 = vsyncpa [#allocation3], 1 }
 0xc57   :  { %1864 = vsyncpa [#allocation3 + $0x1], 1 }
 0xc58   :  { %1865 = vsyncpa [#allocation6], 1 }
 0xc59   :  { %1867 = vsyncpa [#allocation6 + $0x1], 1 }
 0xc5a   :  { %1868 = vsyncpa [#allocation9], 1 }
 0xc5b   :  { %1869 = vsyncpa [#allocation12], 1 }
 0xc5c   :  { %1870 = vsyncpa [#allocation15], 1 }
 0xc5d   :  { %1871 = vsyncpa [#allocation18], 1 }
 0xc5e   :  { %1872 = vsyncpa [#allocation21], 1 }
 0xc5f   :  { %1873 = vsyncpa [#allocation24], 1 }
 0xc60   :  { %1874 = vsyncpa [#allocation27], 1 }
 0xc61   :  { %1875 = vsyncpa [#allocation30], 1 }
 0xc62   :  { %1876 = vsyncpa [#allocation4], 1 }
 0xc63   :  { %1878 = vsyncpa [#allocation4 + $0x1], 1 }

</bundles_post_ra>
